<compile_context>
chip_gen: v5e
topology: v5e:2x2
jax: 0.10.0
libtpu: 0.0.40
codegen_flags: <defaults>
</compile_context>

<pallas_src>
import math
import functools

import jax
import jax.numpy as jnp
from jax import lax
from jax.experimental import pallas as pl
from jax.experimental.pallas import tpu as pltpu


DK = 64          # head dim (matches self.dk = 64)
DROPOUT_P = 0.1  # matches self.dropout_p


def _hash_u32(x):
    # lowbias32-style integer finalizer (uint32 wraparound arithmetic).
    x = x ^ (x >> jnp.uint32(16))
    x = x * jnp.uint32(0x7FEB352D)
    x = x ^ (x >> jnp.uint32(15))
    x = x * jnp.uint32(0x846CA68B)
    x = x ^ (x >> jnp.uint32(16))
    return x


def _attn_kernel(seed_ref, q_ref, k_ref, v_ref, mask_ref, o_ref, *,
                 dropout_p, dk, bt, s):
    # q/k/v/o tiles: (Bt, S, D) in VMEM; mask tile: (S, S), resident (constant
    # index map) additive mask (0 / -inf) precomputed in the wrapper.
    scale = jnp.float32(1.0 / math.sqrt(dk))
    q = q_ref[...].astype(jnp.float32) * scale            # (Bt, S, D)
    k = k_ref[...].astype(jnp.float32)                    # (Bt, S, D)
    v = v_ref[...].astype(jnp.float32)                    # (Bt, S, D)

    # dots[b, i, j] = sum_d q[b, i, d] * k[b, j, d]  (no explicit transpose)
    dots = jnp.einsum('bqd,bkd->bqk', q, k,
                      preferred_element_type=jnp.float32)  # (Bt, S, S)
    dots = dots + mask_ref[...]                            # additive mask

    # numerically stable softmax over the last dim
    row_max = jnp.max(dots, axis=-1, keepdims=True)
    p = jnp.exp(dots - row_max)
    denom = jnp.sum(p, axis=-1, keepdims=True)

    if dropout_p > 0.0:
        keep_prob = 1.0 - dropout_p
        # fold 1/keep_prob into the per-row normalization
        row_scale = jnp.float32(1.0 / keep_prob) / denom   # (Bt, S, 1)
        attn = p * row_scale                               # (Bt, S, S)

        # counter-based PRNG: unique counter per (batch, row, col), mixed with
        # the seed, hashed to uint32 bits, thresholded in the integer domain.
        b0 = pl.program_id(0) * bt
        bi = lax.broadcasted_iota(jnp.int32, (bt, s, s), 0) + b0
        ri = lax.broadcasted_iota(jnp.int32, (bt, s, s), 1)
        ci = lax.broadcasted_iota(jnp.int32, (bt, s, s), 2)
        idx = (bi * s + ri) * s + ci
        seed = seed_ref[0].astype(jnp.uint32)
        ctr = idx.astype(jnp.uint32) + seed * jnp.uint32(0x9E3779B9)
        bits = _hash_u32(ctr)
        thr = jnp.uint32(min(int(keep_prob * (2 ** 32)), 2 ** 32 - 1))
        attn = jnp.where(bits < thr, attn, jnp.float32(0.0))
    else:
        attn = p / denom

    # out[b, i, d] = sum_j attn[b, i, j] * v[b, j, d]
    out = jnp.einsum('bqk,bkd->bqd', attn, v,
                     preferred_element_type=jnp.float32)   # (Bt, S, D)
    o_ref[...] = out.astype(o_ref.dtype)


def sdpa_pallas(q, k, v, attn_mask, seed=0, dropout_p=DROPOUT_P, dk=DK,
                block_b=8):
    """q, k, v: (B, S, D) float32; attn_mask: (S, S) of {0., 1.}."""
    B, S, D = q.shape

    # largest batch tile that divides B (amortize per-grid-step overhead)
    bt = next(t for t in (block_b, 8, 4, 2, 1) if B % t == 0)

    # torch: attn_mask.float().masked_fill(==0, -inf).masked_fill(==1, 0.)
    m = attn_mask.astype(jnp.float32)
    m = jnp.where(m == 0.0, jnp.float32(-jnp.inf), m)
    m = jnp.where(m == 1.0, jnp.float32(0.0), m)

    seed_arr = jnp.asarray([seed], dtype=jnp.int32)
    kernel = functools.partial(_attn_kernel, dropout_p=dropout_p, dk=dk,
                               bt=bt, s=S)

    grid_spec = pltpu.PrefetchScalarGridSpec(
        num_scalar_prefetch=1,
        grid=(B // bt,),
        in_specs=[
            pl.BlockSpec((bt, S, D), lambda b, seed: (b, 0, 0)),   # q
            pl.BlockSpec((bt, S, D), lambda b, seed: (b, 0, 0)),   # k
            pl.BlockSpec((bt, S, D), lambda b, seed: (b, 0, 0)),   # v
            pl.BlockSpec((S, S),     lambda b, seed: (0, 0)),      # add. mask
        ],
        out_specs=pl.BlockSpec((bt, S, D), lambda b, seed: (b, 0, 0)),
    )

    return pl.pallas_call(
        kernel,
        out_shape=jax.ShapeDtypeStruct((B, S, D), q.dtype),
        grid_spec=grid_spec,
        compiler_params=pltpu.CompilerParams(
            # batch tiles are independent (stateless counter-based RNG), so
            # the grid axis can be sharded across v7x's two TensorCores.
            dimension_semantics=("parallel",),
        ),
    )(seed_arr, q, k, v, m)


if __name__ == "__main__":
    # Shapes from the PyTorch module: q/k/v = (16, 32, 64), dk = 64.
    B, S, D = 16, 32, DK
    key = jax.random.PRNGKey(0)
    kq, kk, kv, km = jax.random.split(key, 4)

    q = jax.random.normal(kq, (B, S, D), dtype=jnp.float32)
    k = jax.random.normal(kk, (B, S, D), dtype=jnp.float32)
    v = jax.random.normal(kv, (B, S, D), dtype=jnp.float32)
    # 0/1 mask, mostly ones (like `attn_mask = 1` broadcast in the reference).
    attn_mask = (jax.random.uniform(km, (S, S)) > 0.05).astype(jnp.float32)

    # Correctness check with dropout disabled vs. a pure-JAX reference.
    out_nodrop = sdpa_pallas(q, k, v, attn_mask, seed=0, dropout_p=0.0)
    jax.block_until_ready(out_nodrop)
    qs = q / math.sqrt(DK)
    dots = jnp.einsum('bsd,btd->bst', qs, k)
    add_m = jnp.where(attn_mask == 0.0, jnp.float32(-jnp.inf), jnp.float32(0.0))
    ref = jnp.einsum('bst,btd->bsd', jax.nn.softmax(dots + add_m, axis=-1), v)
    assert jnp.allclose(out_nodrop, ref, atol=1e-5, rtol=1e-5)

    # Full forward with dropout (train=True), as in the module.
    out = sdpa_pallas(q, k, v, attn_mask, seed=0, dropout_p=DROPOUT_P)
    jax.block_until_ready(out)

    assert out.shape == (B, S, D) and out.dtype == jnp.float32
    assert bool(jnp.all(jnp.isfinite(out)))
    print("KERNEL_OK")
</pallas_src>

<mosaic_0001>
module attributes {stable_mosaic.version = 11 : i64} {
  func.func @_attn_kernel(%arg0: i32, %arg1: memref<1xi32, #tpu.memory_space<smem>>, %arg2: memref<8x32x64xf32, #tpu.memory_space<vmem>>, %arg3: memref<8x32x64xf32, #tpu.memory_space<vmem>>, %arg4: memref<8x32x64xf32, #tpu.memory_space<vmem>>, %arg5: memref<32x32xf32, #tpu.memory_space<vmem>>, %arg6: memref<8x32x64xf32, #tpu.memory_space<vmem>>) attributes {dimension_semantics = [#tpu.dimension_semantics<parallel>], iteration_bounds = array<i64: 2>, scalar_prefetch = 1 : i64, scratch_operands = 0 : i64, tpu.core_type = #tpu.core_type<tc>, window_params = [{transform_indices = @transform_0, window_bounds = array<i64: 8, 32, 64>}, {transform_indices = @transform_1, window_bounds = array<i64: 8, 32, 64>}, {transform_indices = @transform_2, window_bounds = array<i64: 8, 32, 64>}, {pipeline_mode = #tpu.pipeline_mode<synchronous>, transform_indices = @transform_3, window_bounds = array<i64: 32, 32>}, {transform_indices = @transform_4, window_bounds = array<i64: 8, 32, 64>}]} {
    %c0 = arith.constant 0 : index
    %c0_0 = arith.constant 0 : index
    %c0_1 = arith.constant 0 : index
    %0 = vector.load %arg2[%c0, %c0_0, %c0_1] : memref<8x32x64xf32, #tpu.memory_space<vmem>>, vector<8x32x64xf32>
    %cst = arith.constant 1.250000e-01 : f32
    %1 = vector.broadcast %cst : f32 to vector<8x32x64xf32>
    %2 = arith.mulf %0, %1 : vector<8x32x64xf32>
    %c0_2 = arith.constant 0 : index
    %c0_3 = arith.constant 0 : index
    %c0_4 = arith.constant 0 : index
    %3 = vector.load %arg3[%c0_2, %c0_3, %c0_4] : memref<8x32x64xf32, #tpu.memory_space<vmem>>, vector<8x32x64xf32>
    %c0_5 = arith.constant 0 : index
    %c0_6 = arith.constant 0 : index
    %c0_7 = arith.constant 0 : index
    %4 = vector.load %arg4[%c0_5, %c0_6, %c0_7] : memref<8x32x64xf32, #tpu.memory_space<vmem>>, vector<8x32x64xf32>
    "tpu.trace_start"() <{level = 10 : i32, message = "bqd,bkd->bqk"}> : () -> ()
    %cst_8 = arith.constant dense<0.000000e+00> : vector<8x32x32xf32>
    %5 = tpu.matmul %2, %3, %cst_8 {dimension_numbers = #tpu.dot_dimension_numbers<[2], [2], [1], [1], [0, 0, 0, 1, 1, 1], [0], [0]>} : vector<8x32x64xf32>, vector<8x32x64xf32>, vector<8x32x32xf32> -> vector<8x32x32xf32>
    "tpu.trace_stop"() : () -> ()
    %c0_9 = arith.constant 0 : index
    %c0_10 = arith.constant 0 : index
    %6 = vector.load %arg5[%c0_9, %c0_10] : memref<32x32xf32, #tpu.memory_space<vmem>>, vector<32x32xf32>
    %7 = vector.shape_cast %6 : vector<32x32xf32> to vector<1x32x32xf32>
    %8 = vector.broadcast %7 : vector<1x32x32xf32> to vector<8x32x32xf32>
    %9 = arith.addf %5, %8 : vector<8x32x32xf32>
    %cst_11 = arith.constant dense<0xFF800000> : vector<8x32xf32>
    %10 = vector.multi_reduction <maximumf>, %9, %cst_11 [2] : vector<8x32x32xf32> to vector<8x32xf32>
    %11 = vector.shape_cast %10 : vector<8x32xf32> to vector<8x32x1xf32>
    %12 = vector.broadcast %11 : vector<8x32x1xf32> to vector<8x32x32xf32>
    %13 = arith.subf %9, %12 : vector<8x32x32xf32>
    %14 = math.exp %13 : vector<8x32x32xf32>
    %cst_12 = arith.constant dense<0.000000e+00> : vector<8x32xf32>
    %15 = vector.multi_reduction <add>, %14, %cst_12 [2] : vector<8x32x32xf32> to vector<8x32xf32>
    %16 = vector.shape_cast %15 : vector<8x32xf32> to vector<8x32x1xf32>
    %17 = vector.broadcast %16 : vector<8x32x1xf32> to vector<8x32x32xf32>
    %18 = arith.divf %14, %17 : vector<8x32x32xf32>
    "tpu.trace_start"() <{level = 10 : i32, message = "bqk,bkd->bqd"}> : () -> ()
    %cst_13 = arith.constant dense<0.000000e+00> : vector<8x32x64xf32>
    %19 = tpu.matmul %18, %4, %cst_13 {dimension_numbers = #tpu.dot_dimension_numbers<[2], [1], [1], [2], [0, 0, 0, 1, 1, 2], [0], [0]>} : vector<8x32x32xf32>, vector<8x32x64xf32>, vector<8x32x64xf32> -> vector<8x32x64xf32>
    "tpu.trace_stop"() : () -> ()
    %c0_14 = arith.constant 0 : index
    %c0_15 = arith.constant 0 : index
    %c0_16 = arith.constant 0 : index
    %20 = vector.load %arg6[%c0_14, %c0_15, %c0_16] : memref<8x32x64xf32, #tpu.memory_space<vmem>>, vector<8x32x64xf32>
    tpu.vector_store %arg6[%c0_14, %c0_15, %c0_16], %19 {strides = array<i32>} : memref<8x32x64xf32, #tpu.memory_space<vmem>>, vector<8x32x64xf32>,
    return
  }
  func.func @transform_0(%arg0: i32, %arg1: memref<1xi32, #tpu.memory_space<smem>>) -> (i32, i32, i32) {
    %c0_i32 = arith.constant 0 : i32
    %c0_i32_0 = arith.constant 0 : i32
    %c0_i32_1 = arith.constant 0 : i32
    return %arg0, %c0_i32, %c0_i32_0 : i32, i32, i32
  }
  func.func @transform_1(%arg0: i32, %arg1: memref<1xi32, #tpu.memory_space<smem>>) -> (i32, i32, i32) {
    %c0_i32 = arith.constant 0 : i32
    %c0_i32_0 = arith.constant 0 : i32
    %c0_i32_1 = arith.constant 0 : i32
    return %arg0, %c0_i32, %c0_i32_0 : i32, i32, i32
  }
  func.func @transform_2(%arg0: i32, %arg1: memref<1xi32, #tpu.memory_space<smem>>) -> (i32, i32, i32) {
    %c0_i32 = arith.constant 0 : i32
    %c0_i32_0 = arith.constant 0 : i32
    %c0_i32_1 = arith.constant 0 : i32
    return %arg0, %c0_i32, %c0_i32_0 : i32, i32, i32
  }
  func.func @transform_3(%arg0: i32, %arg1: memref<1xi32, #tpu.memory_space<smem>>) -> (i32, i32) {
    %c0_i32 = arith.constant 0 : i32
    %c0_i32_0 = arith.constant 0 : i32
    %c0_i32_1 = arith.constant 0 : i32
    return %c0_i32, %c0_i32_0 : i32, i32
  }
  func.func @transform_4(%arg0: i32, %arg1: memref<1xi32, #tpu.memory_space<smem>>) -> (i32, i32, i32) {
    %c0_i32 = arith.constant 0 : i32
    %c0_i32_0 = arith.constant 0 : i32
    %c0_i32_1 = arith.constant 0 : i32
    return %arg0, %c0_i32, %c0_i32_0 : i32, i32, i32
  }
}

</mosaic_0001>

<bundles_post_ra>
// kernel: tpu_custom_call.1
= control target key start
LH: loop header
LB: loop body
LE: loop exit
PB: predicated region body
PF: predicated region fallthrough
CT: control target
= control target key end

     0   :  { %s4258_s0 = inlined_call_operand.<no memory space> [shape: s32[1], index: 0, kind: input, shape index: {}]   ;;  %s4259_s1 = inlined_call_operand.hbm [shape: f32[16,32,64], index: 1, kind: input, shape index: {}]   ;;  %s4260_s2 = inlined_call_operand.hbm [shape: f32[16,32,64], index: 2, kind: input, shape index: {}]   ;;  %s4261_s3 = inlined_call_operand.hbm [shape: f32[16,32,64], index: 3, kind: input, shape index: {}]   ;;  %s4262_s4 = inlined_call_operand.hbm [shape: f32[32,32], index: 4, kind: input, shape index: {}]   ;;  %s4263_s5 = inlined_call_operand.hbm [shape: f32[16,32,64], index: 5, kind: output, shape index: {}]  }
   0x1   :  { %4269 = sst [smem:[#allocation20_spill]] %s4260_s2 }
   0x2   :  { %4270 = sst [smem:[#allocation21_spill]] %s4262_s4 }
   0x3   :  { %11 = vsyncpa [#allocation5], 0 }
   0x4   :  { %13 = vsyncpa [#allocation5 + $0x1], 0 }
   0x5   :  { %14 = vsyncpa [#allocation8], 0 }
   0x6   :  { %16 = vsyncpa [#allocation8 + $0x1], 0 }
   0x7   :  { %17 = vsyncpa [#allocation11], 0 }
   0x8   :  { %18 = vsyncpa [#allocation6], 0 }
   0x9   :  { %20 = vsyncpa [#allocation6 + $0x1], 0  ;;  %s2716_s0 = smov 0   ;;  %s2718_s18 = smov 0  }
   0xa   :  { %s2720_s19 = smov 0   ;;  %s2722_s20 = smov 0  }
   0xb LB: > { %s2737_s21 = sadd.s32 1, %s2679_s20   ;;  %s33_s22 = sadd.s32 1, %s2675_s19  ;;  %s2679_s20 = sphi %s2722_s20, %s4372_s20   ;;  %s2675_s19 = sphi %s2720_s19, %s4376_s19   ;;  %s2671_s18 = sphi %s2718_s18, %s4375_s18   ;;  %s2667_s0 = sphi %s2716_s0, %s4374_s0  }
   0xc   : > { %4271 = sst [smem:[#allocation17_spill]] %s2737_s21  ;;  %s30_s23 = ssub.s32 %s2679_s20, %s2737_s21 }
   0xd   : > { %p40_p0 = scmp.ne.s32.totalorder %s2675_s19, %s2671_s18  ;;  %p31_p1 = scmp.eq.s32.totalorder %s30_s23, 0 }
   0xe   : > { %p41_p2 = scmp.eq.s32.totalorder %s2679_s20, 0  ;;  %p2317_p5 = scmp.lt.s32.totalorder %s2679_s20, 2 }
   0xf   : > { %s2746_s24 = scalar_select %p31_p1, %s2675_s19, %s33_s22  }
  0x10   : > { %p42_p3 = por %p41_p2, %p40_p0  ;;  %s4264_s25 = sand.u32 1, %s2675_s19  }
  0x11   : > { %4272 = sst [smem:[#allocation18_spill]] %s2746_s24  ;;  %s2756_s26 = sshll.u32 %s4264_s25, 8 }
  0x12   : > { %s2759_s27 = sshll.u32 %s2679_s20, 8  ;;  %p2761_p6 = pnand %p2317_p5, %p42_p3 }
  0x13   : > { %s206_s29 = sand.u32 1, %s2679_s20   ;;  %s4274_s2 = sld [smem:[#allocation20_spill]] }
  0x14   : > { %s210_s9 = scalar_lea.vmem [#allocation7], %s2756_s26  ;;  %s2771_s11 = scalar_lea.sflag [#allocation8], %s206_s29 }
  0x15   : > { %s219_s10 = sshll.u32 %s210_s9, 4  ;;  %p2489_p8 = pneg %p2761_p6  ;;  %s220_s10 = int_to_ptr.vmem [resolvable:$true] %s219_s10 }
  0x19   : > { %s216_s7 = scalar_lea.hbm %s4274_s2, %s2759_s27  ;;  %s2492_s16 = scalar_lea.hbm %s4274_s2, 512 }
  0x1a   : > { %s217_s8 = sshll.u32 %s216_s7, 4  ;;  %s218_s8 = int_to_ptr.hbm [resolvable:$true] %s217_s8 }
  0x1b   : > { %s2485_s12 = sshra.s32 %s218_s8, 4  ;;  %s2486_s12 = int_to_ptr.hbm [resolvable:$true] %s2485_s12 }
  0x1c   : > { %s2487_s13 = scalar_lea.hbm %s2486_s12, 256  ;;  %p2493_p11 = scmp.lt.s32.totalorder %s2486_s12, %s4274_s2 }
  0x1d   : > { %p2488_p7 = scmp.ne.s32.totalorder %s2486_s12, %s2487_s13  ;;  %p2494_p12 = scmp.lt.s32.totalorder %s2492_s16, %s2487_s13 }
  0x1f   : > { %p2490_p9 = pnand %p2489_p8, %p2488_p7  ;;  %p2495_p13 = por %p2494_p12, %p2493_p11 }
  0x21   : > { %p2491_p10 = pneg %p2490_p9 }
  0x23   : > { %p2496_p1 = pnand %p2495_p13, %p2491_p10 }
  0x25   : > { %2499 = shalt.err (!%p2496_p1)
}
  0x26   : > { %s2681_s23 = smov 128   ;;  %s2682_s29 = smov 8  }
  0x27   : > { %2308 = dma.hbm_to_vmem [thread:$0]  (!%p2761_p6), %s218_s8, 4096, %s220_s10, %s2771_s11, %s2681_s23, %s2681_s23, %s2682_s29  }
  0x28   : > { %s2791_s30 = sadd.s32 4294967295, %s2679_s20   ;;  %s2154_s6 = sadd.s32 4294967294, %s2679_s20  }
  0x29   : > { %p46_p2 = scmp.ne.s32.totalorder %s2671_s18, %s2667_s0  ;;  %p47_p3 = scmp.eq.s32.totalorder %s2791_s30, 0 }
  0x2a   : > { %p143_p5 = scmp.eq.s32.totalorder %s2791_s30, 1  ;;  %p149_p7 = scmp.eq.s32.totalorder %s2154_s6, 1 }
  0x2b   : > { %p2800_p9 = por %p47_p3, %p46_p2  ;;  %p2155_p10 = scmp.ge.s32.totalorder %s2679_s20, 1 }
  0x2c   : > { %p2808_p11 = por %p143_p5, %p40_p0  ;;  %p2812_p12 = por %p149_p7, %p46_p2 }
  0x2d   : > { %p156_p13 = scmp.lt.s32.totalorder %s2679_s20, 3  ;;  %s4278_s4 = sld [smem:[#allocation21_spill]] }
  0x2e   : > { %s2683_s15 = smov [#allocation10]   ;;  %s193_s6 = scalar_lea.hbm %s4259_s1, %s2759_s27 }
  0x2f   : > { %p2820_p1 = pnand %p2155_p10, %p156_p13  ;;  %s169_s16 = sshll.u32 %s2683_s15, 4  ;;  %s170_s16 = int_to_ptr.vmem [resolvable:$true] %s169_s16 }
  0x30   : > { %s194_s10 = sshll.u32 %s193_s6, 4  ;;  %s187_s12 = scalar_lea.vmem [#allocation4], %s2756_s26  ;;  %s195_s10 = int_to_ptr.hbm [resolvable:$true] %s194_s10 }
  0x31   : > { %p2298_p0 = pneg %p2820_p1  ;;  %s196_s25 = sshll.u32 %s187_s12, 4  ;;  %s197_s25 = int_to_ptr.vmem [resolvable:$true] %s196_s25 }
  0x32   : > { %s4280_s15 = sand.u32 1, %s2675_s19   ;;  %s2552_s6 = scalar_lea.hbm %s4259_s1, 512 }
  0x33   : > { %s167_s13 = sshll.u32 %s4278_s4, 4  ;;  %p2299_p2 = pnand %p2298_p0, %p47_p3  ;;  %s168_s13 = int_to_ptr.hbm [resolvable:$true] %s167_s13 }
  0x34   : > { %s184_s2 = scalar_lea.sflag [#allocation5], %s4280_s15  ;;  %s2545_s4 = sshra.s32 %s195_s10, 4  ;;  %s2546_s4 = int_to_ptr.hbm [resolvable:$true] %s2545_s4 }
  0x35   : > { %2301 = dma.hbm_to_vmem [thread:$0]  (!%p2299_p2), %s168_s13, 512, %s170_s16, [#allocation11], %s2681_s23, %s2681_s23, %s2682_s29  }
  0x36   : > { %s2547_s24 = scalar_lea.hbm %s2546_s4, 256  ;;  %p2553_p13 = scmp.lt.s32.totalorder %s2546_s4, %s4259_s1 }
  0x37   : > { %p2548_p5 = scmp.ne.s32.totalorder %s2546_s4, %s2547_s24  ;;  %p2554_p0 = scmp.lt.s32.totalorder %s2552_s6, %s2547_s24 }
  0x39   : > { %p2550_p7 = pnand %p2548_p5, %p2489_p8  ;;  %p2555_p2 = por %p2554_p0, %p2553_p13 }
  0x3b   : > { %p2551_p10 = pneg %p2550_p7 }
  0x3d   : > { %p2556_p4 = pnand %p2555_p2, %p2551_p10 }
  0x3f   : > { %2559 = shalt.err (!%p2556_p4)
}
  0x40   : > { %2305 = dma.hbm_to_vmem [thread:$0]  (!%p2761_p6), %s195_s10, 4096, %s197_s25, %s184_s2, %s2681_s23, %s2681_s23, %s2682_s29  }
  0x41   : > { %s239_s15 = scalar_lea.hbm %s4261_s3, %s2759_s27  ;;  %s233_s21 = scalar_lea.vmem [#allocation9], %s2756_s26 }
  0x42   : > { %s240_s17 = sshll.u32 %s239_s15, 4  ;;  %s242_s4 = sshll.u32 %s233_s21, 4  ;;  %s241_s17 = int_to_ptr.hbm [resolvable:$true] %s240_s17  ;;  %s243_s4 = int_to_ptr.vmem [resolvable:$true] %s242_s4 }
  0x43   : > { %s2575_s24 = sshra.s32 %s241_s17, 4  ;;  %s2582_s2 = scalar_lea.hbm %s4261_s3, 512  ;;  %s2576_s24 = int_to_ptr.hbm [resolvable:$true] %s2575_s24 }
  0x44   : > { %s2577_s22 = scalar_lea.hbm %s2576_s24, 256  ;;  %p2583_p10 = scmp.lt.s32.totalorder %s2576_s24, %s4261_s3 }
  0x45   : > { %p2578_p4 = scmp.ne.s32.totalorder %s2576_s24, %s2577_s22  ;;  %p2584_p13 = scmp.lt.s32.totalorder %s2582_s2, %s2577_s22 }
  0x47   : > { %p2580_p5 = pnand %p2578_p4, %p2489_p8  ;;  %p2585_p0 = por %p2584_p13, %p2583_p10 }
  0x49   : > { %p2581_p7 = pneg %p2580_p5 }
  0x4b   : > { %p2586_p2 = pnand %p2585_p0, %p2581_p7 }
  0x4d   : > { %2589 = shalt.err (!%p2586_p2)
}
  0x4e   : > { %2311 = dma.hbm_to_vmem [thread:$0]  (!%p2761_p6), %s241_s17, 4096, %s243_s4, %s2771_s11, %s2681_s23, %s2681_s23, %s2682_s29  }
  0x4f   : > { %254 = sbr.rel (%p2820_p1) target bundleno = 748 (0x2ec), region = 36 }
  0x54   : > { %s2875_s26 = sand.u32 1, %s2671_s18  }
  0x55   : > { %s2878_s27 = sshll.u32 %s2875_s26, 8  ;;  %s257_s13 = scalar_lea.sflag [#allocation5], %s2875_s26 }
  0x56   : > { %s2882_s16 = scalar_lea.vmem [#allocation4], %s2878_s27 }
  0x57   : > { %2650 = dma.done.wait (%p2800_p9), %s257_s13, 4096  }
  0x58   : > { %2652 = vsyncadd (%p2800_p9), %s257_s13, 4294963200  ;;  %s266_s28 = sand.u32 1, %s2791_s30   ;;  %s2890_s23 = scalar_lea.vmem [#allocation7], %s2878_s27 }
  0x59   : > { %s267_s11 = scalar_lea.sflag [#allocation8], %s266_s28 }
  0x5a   : > { %2654 = dma.done.wait (%p2800_p9), %s267_s11, 8192  }
  0x5b   : > { %2656 = vsyncadd (%p2800_p9), %s267_s11, 4294959104  ;;  %s2897_s29 = scalar_lea.vmem [#allocation9], %s2878_s27 }
  0x5c   : > { %2658 = dma.done.wait (%p47_p3), [#allocation11], 512  }
  0x5d   : > { %2660 = vsyncadd (%p47_p3), [#allocation11], 4294966784  ;;  %vm4268_vm0 = vcmask 523264   ;;  %v392_v0 = vld [vmem:[%s2890_s23 + $0x18] sm:$0xff]  ;;  %v391_v3 = vld [vmem:[%s2890_s23 + $0x10] sm:$0xff]  ;;  %vm882_vm1 = vcmask 261120  }
  0x5e   : > { %v400_v1 = vld [vmem:[%s2890_s23 + $0x58] sm:$0xff]  ;;  %2176 = vmatpush.xpose.msk.msra.mxu0 %vm4268_vm0, %v392_v0  ;;  %v399_v4 = vld [vmem:[%s2890_s23 + $0x50] sm:$0xff]  ;;  %v390_v8 = vld [vmem:[%s2890_s23 + $0x8] sm:$0xff]  ;;  %s4158_s7 = scalar_lea.vmem [#allocation12], %s2878_s27  ;;  %s2285_s14 = sshll.u32 %s2791_s30, 8 }
  0x5f   : > { %v404_v2 = vld [vmem:[%s2890_s23 + $0x78] sm:$0xff]  ;;  %2192 = vmatpush.xpose.msk.msra.mxu2 %vm4268_vm0, %v400_v1  ;;  %v403_v6 = vld [vmem:[%s2890_s23 + $0x70] sm:$0xff]  ;;  %v398_v9 = vld [vmem:[%s2890_s23 + $0x48] sm:$0xff]  ;;  %s2024_s21 = scalar_lea.hbm %s4263_s5, %s2285_s14  ;;  %s2025_s4 = sshll.u32 %s4158_s7, 4  ;;  %s2026_s4 = int_to_ptr.vmem [resolvable:$true] %s2025_s4 }
  0x60   : > { %2200 = vmatpush.xpose.msk.msra.mxu3 %vm4268_vm0, %v404_v2  ;;  %v396_v5 = vld [vmem:[%s2890_s23 + $0x38] sm:$0xff]  ;;  %v395_v7 = vld [vmem:[%s2890_s23 + $0x30] sm:$0xff]  ;;  %v402_v10 = vld [vmem:[%s2890_s23 + $0x68] sm:$0xff]  ;;  %s2027_s24 = sshll.u32 %s2024_s21, 4  ;;  %s2012_s30 = scalar_lea.sflag [#allocation6], %s2875_s26  ;;  %s2028_s24 = int_to_ptr.hbm [resolvable:$true] %s2027_s24 }
  0x61   : > { %2184 = vmatpush.xpose.msk.msra.mxu1 %vm4268_vm0, %v396_v5  ;;  %v394_v11 = vld [vmem:[%s2890_s23 + $0x28] sm:$0xff]  ;;  %v325_v12 = vld [vmem:[%s2882_s16] sm:$0xff]  ;;  %v416_v19 = vld [vmem:[%s2890_s23 + $0xd8] sm:$0xff]  ;;  %s2619_s22 = sshra.s32 %s2028_s24, 4  ;;  %s2625_s25 = scalar_lea.hbm %s4263_s5, 512  ;;  %s2620_s22 = int_to_ptr.hbm [resolvable:$true] %s2619_s22 }
  0x62   : > { %2177 = vmatpush.xpose.msk.msra.mxu0 %vm4268_vm0, %v391_v3  ;;  %v333_v13 = vld [vmem:[%s2882_s16 + $0x40] sm:$0xff]  ;;  %v357_v20 = vmul.f32 0.125, %v325_v12  ;;  %v408_v23 = vld [vmem:[%s2890_s23 + $0x98] sm:$0xff]  ;;  %v415_v28 = vld [vmem:[%s2890_s23 + $0xd0] sm:$0xff]  ;;  %s2621_s6 = scalar_lea.hbm %s2620_s22, 256  ;;  %p2626_p9 = scmp.lt.s32.totalorder %s2620_s22, %s4263_s5 }
  0x63   : > { %2193 = vmatpush.xpose.msk.msra.mxu2 %vm4268_vm0, %v399_v4  ;;  %v389_v14 = vld [vmem:[%s2890_s23] sm:$0xff]  ;;  %v365_v21 = vmul.f32 0.125, %v333_v13  ;;  %v412_v26 = vld [vmem:[%s2890_s23 + $0xb8] sm:$0xff]  ;;  %v407_v29 = vld [vmem:[%s2890_s23 + $0x90] sm:$0xff]  ;;  %p2622_p6 = scmp.ne.s32.totalorder %s2620_s22, %s2621_s6  ;;  %p2627_p1 = scmp.lt.s32.totalorder %s2625_s25, %s2621_s6 }
  0x64   : > { %2201 = vmatpush.xpose.msk.msra.mxu3 %vm4268_vm0, %v403_v6  ;;  %v397_v15 = vld [vmem:[%s2890_s23 + $0x40] sm:$0xff]  ;;  %v420_v27 = vld [vmem:[%s2890_s23 + $0xf8] sm:$0xff]  ;;  %v334_v30 = vld [vmem:[%s2882_s16 + $0x48] sm:$0xff] }
  0x65   : > { %2185 = vmatpush.xpose.msk.msra.mxu1 %vm4268_vm0, %v395_v7  ;;  %v337_v16 = vld [vmem:[%s2882_s16 + $0x60] sm:$0xff]  ;;  %v326_v31 = vld [vmem:[%s2882_s16 + $0x8] sm:$0xff]  ;;  %v411_v33 = vld [vmem:[%s2890_s23 + $0xb0] sm:$0xff]  ;;  %v366_v36 = vmul.f32 0.125, %v334_v30  ;;  %p2623_p8 = pnand %p2622_p6, %p2808_p11  ;;  %p2628_p4 = por %p2627_p1, %p2626_p9 }
  0x66   : > { %2178 = vmatpush.xpose.msk.msra.mxu0 %vm4268_vm0, %v390_v8  ;;  %v401_v17 = vld [vmem:[%s2890_s23 + $0x60] sm:$0xff]  ;;  %v369_v24 = vmul.f32 0.125, %v337_v16  ;;  %v338_v32 = vld [vmem:[%s2882_s16 + $0x68] sm:$0xff]  ;;  %v419_v35 = vld [vmem:[%s2890_s23 + $0xf0] sm:$0xff]  ;;  %v358_v37 = vmul.f32 0.125, %v326_v31 }
  0x67   : > { %2194 = vmatpush.xpose.msk.msra.mxu2 %vm4268_vm0, %v398_v9  ;;  %v329_v18 = vld [vmem:[%s2882_s16 + $0x20] sm:$0xff]  ;;  %v330_v34 = vld [vmem:[%s2882_s16 + $0x28] sm:$0xff]  ;;  %v370_v40 = vmul.f32 0.125, %v338_v32  ;;  %v327_v46 = vld [vmem:[%s2882_s16 + $0x10] sm:$0xff]  ;;  %p2624_p3 = pneg %p2623_p8 }
  0x68   : > { %2202 = vmatpush.xpose.msk.msra.mxu3 %vm4268_vm0, %v402_v10  ;;  %v393_v22 = vld [vmem:[%s2890_s23 + $0x20] sm:$0xff]  ;;  %v361_v25 = vmul.f32 0.125, %v329_v18  ;;  %v414_v38 = vld [vmem:[%s2890_s23 + $0xc8] sm:$0xff]  ;;  %v362_v41 = vmul.f32 0.125, %v330_v34  ;;  %v335_v47 = vld [vmem:[%s2882_s16 + $0x50] sm:$0xff]  ;;  %v359_v52 = vmul.f32 0.125, %v327_v46 }
  0x69   : > { %2186 = vmatpush.xpose.msk.msra.mxu1 %vm4268_vm0, %v394_v11  ;;  %v406_v39 = vld [vmem:[%s2890_s23 + $0x88] sm:$0xff]  ;;  %v413_v44 = vld [vmem:[%s2890_s23 + $0xc0] sm:$0xff]  ;;  %v339_v48 = vld [vmem:[%s2882_s16 + $0x70] sm:$0xff]  ;;  %v367_v53 = vmul.f32 0.125, %v335_v47  ;;  %p2629_p5 = pnand %p2628_p4, %p2624_p3 }
  0x6a   : > { %2179 = vmatpush.xpose.msk.msra.mxu0 %vm4268_vm0, %v389_v14  ;;  %v410_v42 = vld [vmem:[%s2890_s23 + $0xa8] sm:$0xff]  ;;  %v405_v45 = vld [vmem:[%s2890_s23 + $0x80] sm:$0xff]  ;;  %v331_v50 = vld [vmem:[%s2882_s16 + $0x30] sm:$0xff]  ;;  %v371_v54 = vmul.f32 0.125, %v339_v48 }
  0x6b   : > { %2195 = vmatpush.xpose.msk.msra.mxu2 %vm4268_vm0, %v397_v15  ;;  %v418_v43 = vld [vmem:[%s2890_s23 + $0xe8] sm:$0xff]  ;;  %v409_v49 = vld [vmem:[%s2890_s23 + $0xa0] sm:$0xff]  ;;  %v363_v55 = vmul.f32 0.125, %v331_v50  ;;  %v336_v56 = vld [vmem:[%s2882_s16 + $0x58] sm:$0xff] }
  0x6c   : > { %2203 = vmatpush.xpose.msk.msra.mxu3 %vm4268_vm0, %v401_v17  ;;  %v417_v51 = vld [vmem:[%s2890_s23 + $0xe0] sm:$0xff]  ;;  %v328_v57 = vld [vmem:[%s2882_s16 + $0x18] sm:$0xff]  ;;  %v368_v60 = vmul.f32 0.125, %v336_v56  ;;  %v342_v8 = vld [vmem:[%s2882_s16 + $0x88] sm:$0xff] }
  0x6d   : > { %2187 = vmatpush.xpose.msk.msra.mxu1 %vm4268_vm0, %v393_v22  ;;  %2180 = vmatmul.msk.f32.vlgmr.msra.gmra.mxu0 %vm4268_vm0, %v357_v20  ;;  %v340_v58 = vld [vmem:[%s2882_s16 + $0x78] sm:$0xff]  ;;  %v360_v61 = vmul.f32 0.125, %v328_v57  ;;  %v349_v0 = vld [vmem:[%s2882_s16 + $0xc0] sm:$0xff]  ;;  %v350_v9 = vld [vmem:[%s2882_s16 + $0xc8] sm:$0xff]  ;;  %v374_v12 = vmul.f32 0.125, %v342_v8 }
  0x6e   : > { %2208 = vmatpush.xpose.msk.msrb.mxu0 %vm4268_vm0, %v408_v23  ;;  %2196 = vmatmul.msk.f32.vlgmr.msra.gmra.mxu2 %vm4268_vm0, %v365_v21  ;;  %v332_v59 = vld [vmem:[%s2882_s16 + $0x38] sm:$0xff]  ;;  %v372_v62 = vmul.f32 0.125, %v340_v58  ;;  %v341_v1 = vld [vmem:[%s2882_s16 + $0x80] sm:$0xff]  ;;  %v381_v4 = vmul.f32 0.125, %v349_v0  ;;  %v354_v10 = vld [vmem:[%s2882_s16 + $0xe8] sm:$0xff]  ;;  %v382_v13 = vmul.f32 0.125, %v350_v9 }
  0x6f   : > { %2224 = vmatpush.xpose.msk.msrb.mxu2 %vm4268_vm0, %v416_v19  ;;  %2204 = vmatmul.msk.f32.vlgmr.msra.gmra.mxu3 %vm4268_vm0, %v369_v24  ;;  %v364_v63 = vmul.f32 0.125, %v332_v59  ;;  %v353_v2 = vld [vmem:[%s2882_s16 + $0xe0] sm:$0xff]  ;;  %v373_v5 = vmul.f32 0.125, %v341_v1  ;;  %v346_v11 = vld [vmem:[%s2882_s16 + $0xa8] sm:$0xff]  ;;  %v386_v14 = vmul.f32 0.125, %v354_v10  ;;  %v343_v16 = vld [vmem:[%s2882_s16 + $0x90] sm:$0xff] }
  0x70   : > { %2188 = vmatmul.msk.f32.vlgmr.msra.gmra.mxu1 %vm4268_vm0, %v361_v25  ;;  %2232 = vmatpush.xpose.msk.msrb.mxu3 %vm4268_vm0, %v420_v27  ;;  %v345_v3 = vld [vmem:[%s2882_s16 + $0xa0] sm:$0xff]  ;;  %v385_v6 = vmul.f32 0.125, %v353_v2  ;;  %v378_v15 = vmul.f32 0.125, %v346_v11  ;;  %v351_v17 = vld [vmem:[%s2882_s16 + $0xd0] sm:$0xff]  ;;  %v375_v20 = vmul.f32 0.125, %v343_v16  ;;  %v344_v24 = vld [vmem:[%s2882_s16 + $0x98] sm:$0xff] }
  0x71   : > { %2216 = vmatpush.xpose.msk.msrb.mxu1 %vm4268_vm0, %v412_v26  ;;  %v377_v7 = vmul.f32 0.125, %v345_v3  ;;  %v355_v18 = vld [vmem:[%s2882_s16 + $0xf0] sm:$0xff]  ;;  %v383_v21 = vmul.f32 0.125, %v351_v17  ;;  %v352_v25 = vld [vmem:[%s2882_s16 + $0xd8] sm:$0xff]  ;;  %v3031_v32 = vld [vmem:[#allocation10] sm:$0xff] }
  0x72   : > { %2209 = vmatpush.xpose.msk.msrb.mxu0 %vm4268_vm0, %v407_v29  ;;  %v347_v19 = vld [vmem:[%s2882_s16 + $0xb0] sm:$0xff]  ;;  %v387_v22 = vmul.f32 0.125, %v355_v18  ;;  %v356_v26 = vld [vmem:[%s2882_s16 + $0xf8] sm:$0xff]  ;;  %v384_v29 = vmul.f32 0.125, %v352_v25 }
  0x73   : > { %2225 = vmatpush.xpose.msk.msrb.mxu2 %vm4268_vm0, %v415_v28  ;;  %v379_v23 = vmul.f32 0.125, %v347_v19  ;;  %v348_v27 = vld [vmem:[%s2882_s16 + $0xb8] sm:$0xff]  ;;  %v376_v28 = vmul.f32 0.125, %v344_v24  ;;  %v388_v30 = vmul.f32 0.125, %v356_v26 }
  0x74   : > { %2233 = vmatpush.xpose.msk.msrb.mxu3 %vm4268_vm0, %v419_v35  ;;  %v380_v31 = vmul.f32 0.125, %v348_v27 }
  0x75   : > { %2217 = vmatpush.xpose.msk.msrb.mxu1 %vm4268_vm0, %v411_v33  ;;  %2181 = vmatmul.msk.f32.gmra.mxu0 %vm4268_vm0, %v358_v37 }
  0x76   : > { %2210 = vmatpush.xpose.msk.msrb.mxu0 %vm4268_vm0, %v406_v39  ;;  %2197 = vmatmul.msk.f32.gmra.mxu2 %vm4268_vm0, %v366_v36 }
  0x77   : > { %2226 = vmatpush.xpose.msk.msrb.mxu2 %vm4268_vm0, %v414_v38  ;;  %2205 = vmatmul.msk.f32.gmra.mxu3 %vm4268_vm0, %v370_v40 }
  0x78   : > { %2189 = vmatmul.msk.f32.gmra.mxu1 %vm4268_vm0, %v362_v41  ;;  %2234 = vmatpush.xpose.msk.msrb.mxu3 %vm4268_vm0, %v418_v43 }
  0x79   : > { %2218 = vmatpush.xpose.msk.msrb.mxu1 %vm4268_vm0, %v410_v42 }
  0x7a   : > { %2211 = vmatpush.xpose.msk.msrb.mxu0 %vm4268_vm0, %v405_v45  ;;  %v3048_v45 = vld [vmem:[#allocation10 + $0x8] sm:$0xff] }
  0x7b   : > { %2227 = vmatpush.xpose.msk.msrb.mxu2 %vm4268_vm0, %v413_v44 }
  0x7c   : > { %2235 = vmatpush.xpose.msk.msrb.mxu3 %vm4268_vm0, %v417_v51 }
  0x7d   : > { %2219 = vmatpush.xpose.msk.msrb.mxu1 %vm4268_vm0, %v409_v49  ;;  %2182 = vmatmul.msk.f32.gmra.mxu0 %vm4268_vm0, %v359_v52 }
  0x7e   : > { %2198 = vmatmul.msk.f32.gmra.mxu2 %vm4268_vm0, %v367_v53 }
  0x7f   : > { %2206 = vmatmul.msk.f32.gmra.mxu3 %vm4268_vm0, %v371_v54  ;;  %v3065_v54 = vld [vmem:[#allocation10 + $0x10] sm:$0xff] }
  0x80   : > { %2190 = vmatmul.msk.f32.gmra.mxu1 %vm4268_vm0, %v363_v55 }
  0x85   : > { %2183 = vmatmul.msk.f32.gmra.mxu0 %vm4268_vm0, %v360_v61 }
  0x86   : > { %2199 = vmatmul.msk.f32.gmra.mxu2 %vm4268_vm0, %v368_v60 }
  0x87   : > { %2207 = vmatmul.msk.f32.gmra.mxu3 %vm4268_vm0, %v372_v62 }
  0x88   : > { %2191 = vmatmul.msk.f32.gmra.mxu1 %vm4268_vm0, %v364_v63 }
  0x8d   : > { %2212 = vmatmul.msk.f32.vlgmr.msrb.gmra.mxu0 %vm4268_vm0, %v373_v5  ;;  %v3088_v5 = vld [vmem:[#allocation10 + $0x18] sm:$0xff] }
  0x8e   : > { %2228 = vmatmul.msk.f32.vlgmr.msrb.gmra.mxu2 %vm4268_vm0, %v381_v4 }
  0x8f   : > { %2236 = vmatmul.msk.f32.vlgmr.msrb.gmra.mxu3 %vm4268_vm0, %v385_v6 }
  0x90   : > { %2220 = vmatmul.msk.f32.vlgmr.msrb.gmra.mxu1 %vm4268_vm0, %v377_v7 }
  0x95   : > { %2213 = vmatmul.msk.f32.gmra.mxu0 %vm4268_vm0, %v374_v12 }
  0x96   : > { %2229 = vmatmul.msk.f32.gmra.mxu2 %vm4268_vm0, %v382_v13 }
  0x97   : > { %2237 = vmatmul.msk.f32.gmra.mxu3 %vm4268_vm0, %v386_v14 }
  0x98   : > { %2221 = vmatmul.msk.f32.gmra.mxu1 %vm4268_vm0, %v378_v15 }
  0x9d   : > { %2214 = vmatmul.msk.f32.gmra.mxu0 %vm4268_vm0, %v375_v20 }
  0x9e   : > { %2230 = vmatmul.msk.f32.gmra.mxu2 %vm4268_vm0, %v383_v21 }
  0x9f   : > { %2238 = vmatmul.msk.f32.gmra.mxu3 %vm4268_vm0, %v387_v22 }
  0xa0   : > { %2222 = vmatmul.msk.f32.gmra.mxu1 %vm4268_vm0, %v379_v23 }
  0xa5   : > { %2215 = vmatmul.msk.f32.gmra.mxu0 %vm4268_vm0, %v376_v28 }
  0xa6   : > { %2231 = vmatmul.msk.f32.gmra.mxu2 %vm4268_vm0, %v384_v29 }
  0xa7   : > { %2239 = vmatmul.msk.f32.gmra.mxu3 %vm4268_vm0, %v388_v30 }
  0xa8   : > { %2223 = vmatmul.msk.f32.gmra.mxu1 %vm4268_vm0, %v380_v31 }
  0xea   : > { %v499_v33 = vpop.f32.mrf.mxu0 }
  0xeb   : > { %v3034_v34 = vadd.f32 %v499_v33, %v3031_v32 }
  0xed   : > { %v552_v35 = vpop.f32.mrf.mxu1  ;;  %v883_v36 = vsel %vm882_vm1, %v3034_v34, -inf }
  0xee   : > { %884 = vmax.xlane.f32.xlu1 %v883_v36  ;;  %v3039_v37 = vadd.f32 %v552_v35, %v3031_v32 }
  0xf0   : > { %v895_v43 = vsel %vm882_vm1, %v3039_v37, -inf }
  0xf1   : > { %v605_v38 = vpop.f32.mrf.mxu2 }
  0xf2   : > { %v3042_v39 = vadd.f32 %v605_v38, %v3031_v32  ;;  %v658_v40 = vpop.f32.mrf.mxu3  ;;  %v502_v41 = vpop.f32.mrf.mxu0 }
  0xf3   : > { %v3051_v46 = vadd.f32 %v658_v40, %v3031_v32  ;;  %v3068_v57 = vadd.f32 %v502_v41, %v3048_v45 }
  0xf4   : > { %v907_v42 = vsel %vm882_vm1, %v3042_v39, -inf }
  0xf5   : > { %908 = vmax.xlane.f32.xlu0 %v907_v42  ;;  %v555_v44 = vpop.f32.mrf.mxu1  ;;  %v919_v52 = vsel %vm882_vm1, %v3051_v46, -inf  ;;  %v886_v63 = vsel %vm882_vm1, %v3068_v57, -inf }
  0xf6   : > { %896 = vmax.xlane.f32.xlu1 %v895_v43  ;;  %v3054_v47 = vadd.f32 %v555_v44, %v3048_v45 }
  0xf8   : > { %v898_v53 = vsel %vm882_vm1, %v3054_v47, -inf }
  0xf9   : > { %v608_v48 = vpop.f32.mrf.mxu2 }
  0xfa   : > { %v3057_v49 = vadd.f32 %v608_v48, %v3048_v45  ;;  %v661_v50 = vpop.f32.mrf.mxu3  ;;  %v505_v55 = vpop.f32.mrf.mxu0 }
  0xfb   : > { %v3071_v58 = vadd.f32 %v661_v50, %v3048_v45  ;;  %v3074_v59 = vadd.f32 %v505_v55, %v3065_v54 }
  0xfc   : > { %v910_v51 = vsel %vm882_vm1, %v3057_v49, -inf }
  0xfd   : > { %911 = vmax.xlane.f32.xlu2 %v910_v51  ;;  %920 = vmax.xlane.f32.xlu0 %v919_v52  ;;  %v558_v56 = vpop.f32.mrf.mxu1  ;;  %v922_v62 = vsel %vm882_vm1, %v3071_v58, -inf  ;;  %v889_v0 = vsel %vm882_vm1, %v3074_v59, -inf }
  0xfe   : > { %899 = vmax.xlane.f32.xlu1 %v898_v53  ;;  %v3083_v3 = vadd.f32 %v558_v56, %v3065_v54 }
 0x100   : > { %v901_v9 = vsel %vm882_vm1, %v3083_v3, -inf }
 0x101   : > { %v611_v60 = vpop.f32.mrf.mxu2 }
 0x102   : > { %v664_v61 = vpop.f32.mrf.mxu3  ;;  %v508_v2 = vpop.f32.mrf.mxu0  ;;  %v3103_v14 = vadd.f32 %v611_v60, %v3065_v54 }
 0x103   : > { %v3086_v4 = vadd.f32 %v664_v61, %v3065_v54  ;;  %v3115_v21 = vadd.f32 %v508_v2, %v3088_v5 }
 0x104   : > { %v913_v17 = vsel %vm882_vm1, %v3103_v14, -inf }
 0x105   : > { %923 = vmax.xlane.f32.xlu2 %v922_v62  ;;  %887 = vmax.xlane.f32.xlu0 %v886_v63  ;;  %v561_v1 = vpop.f32.mrf.mxu1  ;;  %v925_v10 = vsel %vm882_vm1, %v3086_v4, -inf  ;;  %v892_v26 = vsel %vm882_vm1, %v3115_v21, -inf }
 0x106   : > { %890 = vmax.xlane.f32.xlu1 %v889_v0  ;;  %v3100_v13 = vadd.f32 %v561_v1, %v3088_v5 }
 0x108   : > { %v904_v18 = vsel %vm882_vm1, %v3100_v13, -inf }
 0x109   : > { %v614_v8 = vpop.f32.mrf.mxu2 }
 0x10a   : > { %v667_v6 = vpop.f32.mrf.mxu3  ;;  %v711_v16 = vpop.f32.mrf.mxu0  ;;  %v3118_v22 = vadd.f32 %v614_v8, %v3088_v5 }
 0x10b   : > { %v3091_v7 = vadd.f32 %v667_v6, %v3088_v5  ;;  %v3133_v30 = vadd.f32 %v711_v16, %v3031_v32 }
 0x10c   : > { %v916_v27 = vsel %vm882_vm1, %v3118_v22, -inf }
 0x10d   : > { %902 = vmax.xlane.f32.xlu2 %v901_v9  ;;  %926 = vmax.xlane.f32.xlu0 %v925_v10  ;;  %v928_v11 = vsel %vm882_vm1, %v3091_v7, -inf  ;;  %v764_v12 = vpop.f32.mrf.mxu1  ;;  %v931_v40 = vsel %vm882_vm1, %v3133_v30, -inf }
 0x10e   : > { %929 = vmax.xlane.f32.xlu1 %v928_v11  ;;  %v3106_v15 = vadd.f32 %v764_v12, %v3031_v32 }
 0x110   : > { %v943_v19 = vsel %vm882_vm1, %v3106_v15, -inf }
 0x111   : > { %v817_v20 = vpop.f32.mrf.mxu2 }
 0x112   : > { %v3121_v23 = vadd.f32 %v817_v20, %v3031_v32  ;;  %v870_v24 = vpop.f32.mrf.mxu3  ;;  %v714_v25 = vpop.f32.mrf.mxu0 }
 0x113   : > { %v3130_v29 = vadd.f32 %v870_v24, %v3031_v32  ;;  %v3136_v31 = vadd.f32 %v714_v25, %v3048_v45 }
 0x114   : > { %v955_v28 = vsel %vm882_vm1, %v3121_v23, -inf }
 0x115   : > { %914 = vmax.xlane.f32.xlu2 %v913_v17  ;;  %905 = vmax.xlane.f32.xlu0 %v904_v18  ;;  %v967_v35 = vsel %vm882_vm1, %v3130_v29, -inf  ;;  %v767_v36 = vpop.f32.mrf.mxu1  ;;  %v934_v41 = vsel %vm882_vm1, %v3136_v31, -inf }
 0x116   : > { %944 = vmax.xlane.f32.xlu1 %v943_v19  ;;  %v3145_v32 = vadd.f32 %v767_v36, %v3048_v45 }
 0x118   : > { %v946_v48 = vsel %vm882_vm1, %v3145_v32, -inf }
 0x119   : > { %v820_v33 = vpop.f32.mrf.mxu2 }
 0x11a   : > { %v873_v38 = vpop.f32.mrf.mxu3  ;;  %v717_v42 = vpop.f32.mrf.mxu0  ;;  %v3163_v60 = vadd.f32 %v820_v33, %v3048_v45 }
 0x11b   : > { %v3148_v43 = vadd.f32 %v873_v38, %v3048_v45  ;;  %v3151_v44 = vadd.f32 %v717_v42, %v3065_v54 }
 0x11c   : > { %v958_v0 = vsel %vm882_vm1, %v3163_v60, -inf }
 0x11d   : > { %893 = vmax.xlane.f32.xlu2 %v892_v26  ;;  %917 = vmax.xlane.f32.xlu0 %v916_v27  ;;  %v970_v50 = vsel %vm882_vm1, %v3148_v43, -inf  ;;  %v770_v52 = vpop.f32.mrf.mxu1  ;;  %v937_v53 = vsel %vm882_vm1, %v3151_v44, -inf }
 0x11e   : > { %956 = vmax.xlane.f32.xlu1 %v955_v28  ;;  %v3178_v45 = vadd.f32 %v770_v52, %v3065_v54 }
 0x120   : > { %v949_v11 = vsel %vm882_vm1, %v3178_v45, -inf }
 0x121   : > { %v823_v51 = vpop.f32.mrf.mxu2 }
 0x122   : > { %v876_v55 = vpop.f32.mrf.mxu3  ;;  %v3160_v56 = vadd.f32 %v823_v51, %v3065_v54  ;;  %v720_v63 = vpop.f32.mrf.mxu0 }
 0x123   : > { %v3166_v61 = vadd.f32 %v876_v55, %v3065_v54  ;;  %v3175_v6 = vadd.f32 %v720_v63, %v3088_v5 }
 0x124   : > { %v961_v62 = vsel %vm882_vm1, %v3160_v56, -inf }
 0x125   : > { %968 = vmax.xlane.f32.xlu2 %v967_v35  ;;  %932 = vmax.xlane.f32.xlu0 %v931_v40  ;;  %v973_v1 = vsel %vm882_vm1, %v3166_v61, -inf  ;;  %v773_v2 = vpop.f32.mrf.mxu1  ;;  %v940_v9 = vsel %vm882_vm1, %v3175_v6, -inf }
 0x126   : > { %935 = vmax.xlane.f32.xlu1 %v934_v41  ;;  %v3181_v8 = vadd.f32 %v773_v2, %v3088_v5 }
 0x128   : > { %v952_v12 = vsel %vm882_vm1, %v3181_v8, -inf }
 0x129   : > { %v826_v10 = vpop.f32.mrf.mxu2 }
 0x12a   : > { %v879_v16 = vpop.f32.mrf.mxu3  ;;  %v3190_v17 = vadd.f32 %v826_v10, %v3088_v5 }
 0x12b   : > { %v3193_v54 = vadd.f32 %v879_v16, %v3088_v5 }
 0x12c   : > { %v964_v18 = vsel %vm882_vm1, %v3190_v17, -inf }
 0x12d   : > { %947 = vmax.xlane.f32.xlu2 %v946_v48  ;;  %971 = vmax.xlane.f32.xlu0 %v970_v50  ;;  %v976_v19 = vsel %vm882_vm1, %v3193_v54, -inf }
 0x12e   : > { %938 = vmax.xlane.f32.xlu1 %v937_v53 }
 0x135   : > { %959 = vmax.xlane.f32.xlu2 %v958_v0  ;;  %962 = vmax.xlane.f32.xlu0 %v961_v62 }
 0x136   : > { %974 = vmax.xlane.f32.xlu1 %v973_v1 }
 0x13d   : > { %950 = vmax.xlane.f32.xlu2 %v949_v11  ;;  %941 = vmax.xlane.f32.xlu0 %v940_v9 }
 0x13e   : > { %953 = vmax.xlane.f32.xlu1 %v952_v12 }
 0x145   : > { %965 = vmax.xlane.f32.xlu0 %v964_v18 }
 0x146   : > { %977 = vmax.xlane.f32.xlu1 %v976_v19 }
 0x161   : > { %v885_v20 = vpop.xlane.xlu1 %884 }
 0x162   : > { %v979_v24 = vsub.f32 %v3034_v34, %v885_v20 }
 0x164   : > { %v1011_v25 = vmul.f32 1.442695, %v979_v24 }
 0x166   : > { %2357 = vpow2.f32 %v1011_v25 }
 0x168   : > { %v909_v26 = vpop.xlane.xlu0 %908 }
 0x169   : > { %v987_v27 = vsub.f32 %v3042_v39, %v909_v26  ;;  %v897_v28 = vpop.xlane.xlu1 %896 }
 0x16a   : > { %v983_v5 = vsub.f32 %v3039_v37, %v897_v28 }
 0x16b   : > { %v1027_v33 = vmul.f32 1.442695, %v987_v27 }
 0x16c   : > { %v3202_v35 = vpop.eup %2357  ;;  %v1019_v36 = vmul.f32 1.442695, %v983_v5 }
 0x16d   : > { %2359 = vpow2.f32 %v1027_v33  ;;  %v1075_v38 = vsel %vm882_vm1, %v3202_v35, 0.0 }
 0x16e   : > { %2361 = vpow2.f32 %v1019_v36  ;;  %1076 = vadd.xlane.f32.xlu2 %v1075_v38 }
 0x170   : > { %v912_v40 = vpop.xlane.xlu2 %911  ;;  %v921_v34 = vpop.xlane.xlu0 %920 }
 0x171   : > { %v988_v41 = vsub.f32 %v3057_v49, %v912_v40  ;;  %v991_v42 = vsub.f32 %v3051_v46, %v921_v34  ;;  %v900_v39 = vpop.xlane.xlu1 %899 }
 0x172   : > { %v984_v52 = vsub.f32 %v3054_v47, %v900_v39 }
 0x173   : > { %v3208_v48 = vpop.eup %2359  ;;  %v1029_v50 = vmul.f32 1.442695, %v988_v41  ;;  %v1035_v37 = vmul.f32 1.442695, %v991_v42 }
 0x174   : > { %v3210_v51 = vpop.eup %2361  ;;  %v1099_v53 = vsel %vm882_vm1, %v3208_v48, 0.0  ;;  %v1021_v62 = vmul.f32 1.442695, %v984_v52 }
 0x175   : > { %2363 = vpow2.f32 %v1029_v50  ;;  %v1087_v55 = vsel %vm882_vm1, %v3210_v51, 0.0 }
 0x176   : > { %2365 = vpow2.f32 %v1035_v37  ;;  %1100 = vadd.xlane.f32.xlu2 %v1099_v53  ;;  %1088 = vadd.xlane.f32.xlu0 %v1087_v55 }
 0x177   : > { %2367 = vpow2.f32 %v1021_v62 }
 0x178   : > { %v924_v46 = vpop.xlane.xlu2 %923  ;;  %v888_v49 = vpop.xlane.xlu0 %887 }
 0x179   : > { %v980_v63 = vsub.f32 %v3068_v57, %v888_v49  ;;  %v891_v0 = vpop.xlane.xlu1 %890  ;;  %v992_v2 = vsub.f32 %v3071_v58, %v924_v46 }
 0x17a   : > { %v981_v10 = vsub.f32 %v3074_v59, %v891_v0 }
 0x17b   : > { %v3218_v1 = vpop.eup %2363  ;;  %v1013_v47 = vmul.f32 1.442695, %v980_v63  ;;  %v1037_v57 = vmul.f32 1.442695, %v992_v2 }
 0x17c   : > { %v3221_v9 = vpop.eup %2365  ;;  %v1102_v11 = vsel %vm882_vm1, %v3218_v1, 0.0  ;;  %v1015_v16 = vmul.f32 1.442695, %v981_v10 }
 0x17d   : > { %1103 = vadd.xlane.f32.xlu1 %v1102_v11  ;;  %2369 = vpow2.f32 %v1013_v47  ;;  %v1111_v12 = vsel %vm882_vm1, %v3221_v9, 0.0  ;;  %v3229_v24 = vpop.eup %2367 }
 0x17e   : > { %1112 = vadd.xlane.f32.xlu0 %v1111_v12  ;;  %2371 = vpow2.f32 %v1037_v57 }
 0x17f   : > { %2373 = vpow2.f32 %v1015_v16 }
 0x180   : > { %v903_v18 = vpop.xlane.xlu2 %902  ;;  %v927_v19 = vpop.xlane.xlu0 %926 }
 0x181   : > { %v985_v58 = vsub.f32 %v3083_v3, %v903_v18  ;;  %v930_v20 = vpop.xlane.xlu1 %929  ;;  %v993_v25 = vsub.f32 %v3086_v4, %v927_v19  ;;  %v1090_v3 = vsel %vm882_vm1, %v3229_v24, 0.0 }
 0x182   : > { %v994_v27 = vsub.f32 %v3091_v7, %v930_v20 }
 0x183   : > { %v1023_v59 = vmul.f32 1.442695, %v985_v58  ;;  %v3232_v26 = vpop.eup %2369  ;;  %v1039_v33 = vmul.f32 1.442695, %v993_v25 }
 0x184   : > { %v1078_v28 = vsel %vm882_vm1, %v3232_v26, 0.0  ;;  %v1041_v5 = vmul.f32 1.442695, %v994_v27  ;;  %v3239_v40 = vpop.eup %2371 }
 0x185   : > { %2375 = vpow2.f32 %v1023_v59  ;;  %1079 = vadd.xlane.f32.xlu2 %v1078_v28  ;;  %v3242_v34 = vpop.eup %2373 }
 0x186   : > { %1091 = vadd.xlane.f32.xlu0 %v1090_v3  ;;  %2377 = vpow2.f32 %v1039_v33  ;;  %v1081_v52 = vsel %vm882_vm1, %v3242_v34, 0.0 }
 0x187   : > { %2379 = vpow2.f32 %v1041_v5 }
 0x188   : > { %v915_v36 = vpop.xlane.xlu2 %914  ;;  %v906_v38 = vpop.xlane.xlu0 %905 }
 0x189   : > { %v989_v4 = vsub.f32 %v3103_v14, %v915_v36  ;;  %v945_v7 = vpop.xlane.xlu1 %944  ;;  %v986_v39 = vsub.f32 %v3100_v13, %v906_v38  ;;  %v1114_v14 = vsel %vm882_vm1, %v3239_v40, 0.0 }
 0x18a   : > { %v999_v50 = vsub.f32 %v3106_v15, %v945_v7 }
 0x18b   : > { %v3244_v41 = vpop.eup %2375  ;;  %v1031_v42 = vmul.f32 1.442695, %v989_v4  ;;  %v1025_v53 = vmul.f32 1.442695, %v986_v39 }
 0x18c   : > { %v1093_v37 = vsel %vm882_vm1, %v3244_v41, 0.0  ;;  %v1051_v55 = vmul.f32 1.442695, %v999_v50  ;;  %v3254_v49 = vpop.eup %2377 }
 0x18d   : > { %2381 = vpow2.f32 %v1031_v42  ;;  %1094 = vadd.xlane.f32.xlu1 %v1093_v37  ;;  %1115 = vadd.xlane.f32.xlu2 %v1114_v14  ;;  %v3257_v62 = vpop.eup %2379 }
 0x18e   : > { %1082 = vadd.xlane.f32.xlu0 %v1081_v52  ;;  %2383 = vpow2.f32 %v1025_v53  ;;  %v1120_v12 = vsel %vm882_vm1, %v3257_v62, 0.0 }
 0x18f   : > { %2385 = vpow2.f32 %v1051_v55 }
 0x190   : > { %v894_v46 = vpop.xlane.xlu2 %893  ;;  %v918_v13 = vpop.xlane.xlu0 %917 }
 0x191   : > { %v982_v15 = vsub.f32 %v3115_v21, %v894_v46  ;;  %v957_v63 = vpop.xlane.xlu1 %956  ;;  %v990_v47 = vsub.f32 %v3118_v22, %v918_v13  ;;  %v1117_v21 = vsel %vm882_vm1, %v3254_v49, 0.0 }
 0x192   : > { %v1003_v10 = vsub.f32 %v3121_v23, %v957_v63 }
 0x193   : > { %v3259_v0 = vpop.eup %2381  ;;  %v1017_v2 = vmul.f32 1.442695, %v982_v15  ;;  %v1033_v57 = vmul.f32 1.442695, %v990_v47 }
 0x194   : > { %v1105_v11 = vsel %vm882_vm1, %v3259_v0, 0.0  ;;  %v1059_v16 = vmul.f32 1.442695, %v1003_v10  ;;  %v3269_v19 = vpop.eup %2383 }
 0x195   : > { %2387 = vpow2.f32 %v1017_v2  ;;  %1106 = vadd.xlane.f32.xlu1 %v1105_v11  ;;  %1118 = vadd.xlane.f32.xlu2 %v1117_v21  ;;  %v3272_v58 = vpop.eup %2385 }
 0x196   : > { %1121 = vadd.xlane.f32.xlu0 %v1120_v12  ;;  %2389 = vpow2.f32 %v1033_v57  ;;  %v1135_v33 = vsel %vm882_vm1, %v3272_v58, 0.0 }
 0x197   : > { %2391 = vpow2.f32 %v1059_v16 }
 0x198   : > { %v969_v18 = vpop.xlane.xlu2 %968  ;;  %v933_v22 = vpop.xlane.xlu0 %932 }
 0x199   : > { %v1007_v23 = vsub.f32 %v3130_v29, %v969_v18  ;;  %v936_v20 = vpop.xlane.xlu1 %935  ;;  %v995_v27 = vsub.f32 %v3133_v30, %v933_v22  ;;  %v1096_v29 = vsel %vm882_vm1, %v3269_v19, 0.0 }
 0x19a   : > { %v996_v28 = vsub.f32 %v3136_v31, %v936_v20 }
 0x19b   : > { %v3274_v59 = vpop.eup %2387  ;;  %v1067_v25 = vmul.f32 1.442695, %v1007_v23  ;;  %v1043_v5 = vmul.f32 1.442695, %v995_v27 }
 0x19c   : > { %v1084_v3 = vsel %vm882_vm1, %v3274_v59, 0.0  ;;  %v1045_v36 = vmul.f32 1.442695, %v996_v28  ;;  %v3284_v4 = vpop.eup %2389 }
 0x19d   : > { %2393 = vpow2.f32 %v1067_v25  ;;  %1085 = vadd.xlane.f32.xlu1 %v1084_v3  ;;  %1097 = vadd.xlane.f32.xlu2 %v1096_v29  ;;  %v3287_v7 = vpop.eup %2391  ;;  %v1108_v52 = vsel %vm882_vm1, %v3284_v4, 0.0 }
 0x19e   : > { %1136 = vadd.xlane.f32.xlu0 %v1135_v33  ;;  %2395 = vpow2.f32 %v1043_v5 }
 0x19f   : > { %2397 = vpow2.f32 %v1045_v36 }
 0x1a0   : > { %v948_v38 = vpop.xlane.xlu2 %947  ;;  %v972_v30 = vpop.xlane.xlu0 %971 }
 0x1a1   : > { %v1000_v31 = vsub.f32 %v3145_v32, %v948_v38  ;;  %v939_v42 = vpop.xlane.xlu1 %938  ;;  %v1008_v37 = vsub.f32 %v3148_v43, %v972_v30  ;;  %v1147_v32 = vsel %vm882_vm1, %v3287_v7, 0.0 }
 0x1a2   : > { %v997_v47 = vsub.f32 %v3151_v44, %v939_v42 }
 0x1a3   : > { %v3289_v39 = vpop.eup %2393  ;;  %v1053_v50 = vmul.f32 1.442695, %v1000_v31  ;;  %v1069_v53 = vmul.f32 1.442695, %v1008_v37 }
 0x1a4   : > { %v1159_v14 = vsel %vm882_vm1, %v3289_v39, 0.0  ;;  %v3298_v13 = vpop.eup %2395  ;;  %v1047_v44 = vmul.f32 1.442695, %v997_v47 }
 0x1a5   : > { %2399 = vpow2.f32 %v1053_v50  ;;  %1160 = vadd.xlane.f32.xlu1 %v1159_v14  ;;  %1109 = vadd.xlane.f32.xlu2 %v1108_v52  ;;  %v3301_v15 = vpop.eup %2397 }
 0x1a6   : > { %1148 = vadd.xlane.f32.xlu0 %v1147_v32  ;;  %2401 = vpow2.f32 %v1069_v53  ;;  %v1126_v16 = vsel %vm882_vm1, %v3301_v15, 0.0 }
 0x1a8   : > { %v960_v55 = vpop.xlane.xlu2 %959  ;;  %v963_v46 = vpop.xlane.xlu0 %962 }
 0x1a9   : > { %v1004_v43 = vsub.f32 %v3163_v60, %v960_v55  ;;  %v975_v63 = vpop.xlane.xlu1 %974  ;;  %v1005_v21 = vsub.f32 %v3160_v56, %v963_v46  ;;  %v1123_v60 = vsel %vm882_vm1, %v3298_v13, 0.0 }
 0x1aa   : > { %v1009_v11 = vsub.f32 %v3166_v61, %v975_v63 }
 0x1ab   : > { %v3303_v2 = vpop.eup %2399  ;;  %v1061_v10 = vmul.f32 1.442695, %v1004_v43  ;;  %v1063_v61 = vmul.f32 1.442695, %v1005_v21  ;;  %v424_v21 = vld [vmem:[%s2897_s29 + $0x18] sm:$0xff] }
 0x1ac   : > { %v1138_v12 = vsel %vm882_vm1, %v3303_v2, 0.0  ;;  %v1071_v57 = vmul.f32 1.442695, %v1009_v11  ;;  %v3314_v56 = vpop.eup %2401  ;;  %1675 = vmatpush.msra.mxu0 %v424_v21 }
 0x1ad   : > { %2403 = vpow2.f32 %v1061_v10  ;;  %1139 = vadd.xlane.f32.xlu1 %v1138_v12  ;;  %1124 = vadd.xlane.f32.xlu2 %v1123_v60  ;;  %v1162_v3 = vsel %vm882_vm1, %v3314_v56, 0.0  ;;  %v423_v12 = vld [vmem:[%s2897_s29 + $0x10] sm:$0xff]  ;;  %v421_v60 = vld [vmem:[%s2897_s29] sm:$0xff] }
 0x1ae   : > { %2405 = vpow2.f32 %v1071_v57  ;;  %1127 = vadd.xlane.f32.xlu0 %v1126_v16  ;;  %1676 = vmatpush.msra.mxu0 %v423_v12  ;;  %v422_v57 = vld [vmem:[%s2897_s29 + $0x8] sm:$0xff]  ;;  %v432_v16 = vld [vmem:[%s2897_s29 + $0x58] sm:$0xff] }
 0x1af   : > { %2407 = vpow2.f32 %v1047_v44  ;;  %v428_v44 = vld [vmem:[%s2897_s29 + $0x38] sm:$0xff]  ;;  %1757 = vmatpush.msra.mxu2 %v432_v16 }
 0x1b0   : > { %v942_v18 = vpop.xlane.xlu0 %941  ;;  %v951_v22 = vpop.xlane.xlu2 %950  ;;  %2409 = vpow2.f32 %v1063_v61  ;;  %1677 = vmatpush.msra.mxu0 %v422_v57  ;;  %1716 = vmatpush.msra.mxu1 %v428_v44  ;;  %v427_v61 = vld [vmem:[%s2897_s29 + $0x30] sm:$0xff] }
 0x1b1   : > { %v954_v23 = vpop.xlane.xlu1 %953  ;;  %v1001_v25 = vsub.f32 %v3178_v45, %v951_v22  ;;  %v998_v37 = vsub.f32 %v3175_v6, %v942_v18  ;;  %v431_v18 = vld [vmem:[%s2897_s29 + $0x50] sm:$0xff]  ;;  %v426_v22 = vld [vmem:[%s2897_s29 + $0x28] sm:$0xff] }
 0x1b2   : > { %v1002_v31 = vsub.f32 %v3181_v8, %v954_v23  ;;  %1678 = vmatpush.msra.mxu0 %v421_v60  ;;  %1717 = vmatpush.msra.mxu1 %v427_v61  ;;  %v430_v23 = vld [vmem:[%s2897_s29 + $0x48] sm:$0xff] }
 0x1b3   : > { %v3316_v20 = vpop.eup %2403  ;;  %v1055_v33 = vmul.f32 1.442695, %v1001_v25  ;;  %v1049_v53 = vmul.f32 1.442695, %v998_v37  ;;  %1758 = vmatpush.msra.mxu2 %v431_v18  ;;  %v425_v25 = vld [vmem:[%s2897_s29 + $0x20] sm:$0xff] }
 0x1b4   : > { %v1150_v27 = vsel %vm882_vm1, %v3316_v20, 0.0  ;;  %v3321_v28 = vpop.eup %2405  ;;  %1718 = vmatpush.msra.mxu1 %v426_v22 }
 0x1b5   : > { %1151 = vadd.xlane.f32.xlu1 %v1150_v27  ;;  %1163 = vadd.xlane.f32.xlu2 %v1162_v3  ;;  %v1165_v29 = vsel %vm882_vm1, %v3321_v28, 0.0  ;;  %v3327_v36 = vpop.eup %2407  ;;  %2411 = vpow2.f32 %v1055_v33  ;;  %v429_v27 = vld [vmem:[%s2897_s29 + $0x40] sm:$0xff]  ;;  %v436_v3 = vld [vmem:[%s2897_s29 + $0x78] sm:$0xff]  ;;  %v435_v33 = vld [vmem:[%s2897_s29 + $0x70] sm:$0xff] }
 0x1b6   : > { %1166 = vadd.xlane.f32.xlu0 %v1165_v29  ;;  %v3330_v38 = vpop.eup %2409  ;;  %v1129_v14 = vsel %vm882_vm1, %v3327_v36, 0.0  ;;  %1759 = vmatpush.msra.mxu2 %v430_v23 }
 0x1b7   : > { %v1153_v32 = vsel %vm882_vm1, %v3330_v38, 0.0  ;;  %1719 = vmatpush.msra.mxu1 %v425_v25  ;;  %1798 = vmatpush.msra.mxu3 %v436_v3 }
 0x1b8   : > { %v966_v5 = vpop.xlane.xlu0 %965  ;;  %1760 = vmatpush.msra.mxu2 %v429_v27 }
 0x1b9   : > { %v1006_v45 = vsub.f32 %v3190_v17, %v966_v5  ;;  %v978_v30 = vpop.xlane.xlu1 %977  ;;  %v1057_v17 = vmul.f32 1.442695, %v1002_v31  ;;  %1799 = vmatpush.msra.mxu3 %v435_v33  ;;  %v434_v5 = vld [vmem:[%s2897_s29 + $0x68] sm:$0xff] }
 0x1ba   : > { %v1010_v50 = vsub.f32 %v3193_v54, %v978_v30 }
 0x1bb   : > { %v1065_v42 = vmul.f32 1.442695, %v1006_v45  ;;  %v3339_v8 = vpop.eup %2411  ;;  %1800 = vmatpush.msra.mxu3 %v434_v5  ;;  %v433_v45 = vld [vmem:[%s2897_s29 + $0x60] sm:$0xff] }
 0x1bc   : > { %v1073_v52 = vmul.f32 1.442695, %v1010_v50  ;;  %v1141_v46 = vsel %vm882_vm1, %v3339_v8, 0.0 }
 0x1bd   : > { %2413 = vpow2.f32 %v1065_v42  ;;  %1130 = vadd.xlane.f32.xlu1 %v1129_v14  ;;  %1154 = vadd.xlane.f32.xlu2 %v1153_v32 }
 0x1be   : > { %2415 = vpow2.f32 %v1073_v52  ;;  %1801 = vmatpush.msra.mxu3 %v433_v45 }
 0x1bf   : > { %2417 = vpow2.f32 %v1057_v17 }
 0x1c0   : > { %2419 = vpow2.f32 %v1049_v53 }
 0x1c3   : > { %v3341_v55 = vpop.eup %2413 }
 0x1c4   : > { %v1156_v6 = vsel %vm882_vm1, %v3341_v55, 0.0  ;;  %v3345_v54 = vpop.eup %2415 }
 0x1c5   : > { %1157 = vadd.xlane.f32.xlu0 %v1156_v6  ;;  %1142 = vadd.xlane.f32.xlu2 %v1141_v46  ;;  %v1168_v43 = vsel %vm882_vm1, %v3345_v54, 0.0  ;;  %v3351_v63 = vpop.eup %2417 }
 0x1c6   : > { %1169 = vadd.xlane.f32.xlu1 %v1168_v43  ;;  %4281 = vst [vmem:[#allocation19_spill] sm:$0xff] %v3351_v63  ;;  %v3353_v47 = vpop.eup %2419  ;;  %v1144_v10 = vsel %vm882_vm1, %v3351_v63, 0.0 }
 0x1c7   : > { %v1132_v11 = vsel %vm882_vm1, %v3353_v47, 0.0 }
 0x1cd   : > { %1145 = vadd.xlane.f32.xlu0 %v1144_v10  ;;  %1133 = vadd.xlane.f32.xlu2 %v1132_v11 }
 0x1e1   : > { %v1077_v29 = vpop.xlane.xlu2 %1076 }
 0x1e2   : > { %2421 = vrcp.f32 %v1077_v29  ;;  %v1182_v14 = vand.u32 2147483648, %v1077_v29  ;;  %v1180_v32 = vand.u32 2147483647, %v1077_v29  ;;  %vm1176_vm3 = vweird.f32 %v1077_v29 }
 0x1e4   : > { %v1183_v46 = vor.u32 1.1754944e-38, %v1182_v14  ;;  %vm1181_vm5 = vcmp.eq.f32.partialorder %v1180_v32, 8.507059e+37 }
 0x1e8   : > { %v2422_v30 = vpop.eup %2421 }
 0x1e9   : > { %v1172_v31 = vmul.f32 %v2422_v30, %v1077_v29  ;;  %v1101_v42 = vpop.xlane.xlu2 %1100  ;;  %v1089_v50 = vpop.xlane.xlu0 %1088  ;;  %vm1177_vm2 = vweird.f32 %v2422_v30 }
 0x1ea   : > { %2423 = vrcp.f32 %v1101_v42  ;;  %vm1178_vm4 = vmor %vm1176_vm3, %vm1177_vm2  ;;  %v1300_v16 = vand.u32 2147483647, %v1101_v42  ;;  %v1302_v44 = vand.u32 2147483648, %v1101_v42  ;;  %v1242_v23 = vand.u32 2147483648, %v1089_v50 }
 0x1eb   : > { %v1173_v37 = vsub.f32 1.0, %v1172_v31  ;;  %2425 = vrcp.f32 %v1089_v50  ;;  %v1240_v3 = vand.u32 2147483647, %v1089_v50  ;;  %vm1296_vm8 = vweird.f32 %v1101_v42 }
 0x1ec   : > { %vm1301_vm10 = vcmp.eq.f32.partialorder %v1300_v16, 8.507059e+37  ;;  %v1303_v5 = vor.u32 1.1754944e-38, %v1302_v44  ;;  %vm1236_vm11 = vweird.f32 %v1089_v50 }
 0x1ed   : > { %v1174_v52 = vmul.f32 %v2422_v30, %v1173_v37  ;;  %v1243_v37 = vor.u32 1.1754944e-38, %v1242_v23  ;;  %vm1241_vm13 = vcmp.eq.f32.partialorder %v1240_v3, 8.507059e+37 }
 0x1ef   : > { %v1175_v17 = vadd.f32 %v2422_v30, %v1174_v52 }
 0x1f0   : > { %v3375_v53 = vpop.xlane.xlu1 %1103  ;;  %v2424_v6 = vpop.eup %2423 }
 0x1f1   : > { %2427 = vrcp.f32 %v3375_v53  ;;  %v2426_v43 = vpop.eup %2425  ;;  %v1179_v10 = vsel %vm1178_vm4, %v2422_v30, %v1175_v17  ;;  %v1292_v11 = vmul.f32 %v2424_v6, %v1101_v42  ;;  %v3378_v21 = vpop.xlane.xlu0 %1112  ;;  %vm1297_vm6 = vweird.f32 %v2424_v6 }
 0x1f2   : > { %v1184_v12 = vsel %vm1181_vm5, %v1183_v46, %v1179_v10  ;;  %v1232_v57 = vmul.f32 %v2426_v43, %v1089_v50  ;;  %2429 = vrcp.f32 %v3378_v21  ;;  %vm1237_vm7 = vweird.f32 %v2426_v43  ;;  %vm1298_vm9 = vmor %vm1296_vm8, %vm1297_vm6 }
 0x1f3   : > { %v1293_v60 = vsub.f32 1.0, %v1292_v11  ;;  %v1185_v18 = vmul.f32 %v3202_v35, %v1184_v12  ;;  %vm1238_vm12 = vmor %vm1236_vm11, %vm1237_vm7  ;;  %v1317_v50 = vand.u32 2147483648, %v3375_v53  ;;  %v1360_v11 = vand.u32 2147483647, %v3378_v21 }
 0x1f4   : > { %v1233_v61 = vsub.f32 1.0, %v1232_v57  ;;  %v1362_v57 = vand.u32 2147483648, %v3378_v21  ;;  %vm1311_vm2 = vweird.f32 %v3375_v53  ;;  %vm1356_vm3 = vweird.f32 %v3378_v21 }
 0x1f5   : > { %v1294_v22 = vmul.f32 %v2424_v6, %v1293_v60  ;;  %2240 = vmatmul.msk.f32.vlgmr.msra.gmra.mxu0 %vm882_vm1, %v1185_v18  ;;  %v1315_v18 = vand.u32 2147483647, %v3375_v53  ;;  %vm1361_vm6 = vcmp.eq.f32.partialorder %v1360_v11, 8.507059e+37 }
 0x1f6   : > { %v1234_v27 = vmul.f32 %v2426_v43, %v1233_v61  ;;  %v1318_v61 = vor.u32 1.1754944e-38, %v1317_v50 }
 0x1f7   : > { %v3382_v25 = vpop.eup %2427  ;;  %v1295_v29 = vadd.f32 %v2424_v6, %v1294_v22  ;;  %vm1316_vm7 = vcmp.eq.f32.partialorder %v1315_v18, 8.507059e+37 }
 0x1f8   : > { %v1307_v33 = vmul.f32 %v3382_v25, %v3375_v53  ;;  %v1235_v45 = vadd.f32 %v2426_v43, %v1234_v27  ;;  %v3387_v35 = vpop.xlane.xlu2 %1079  ;;  %v2430_v30 = vpop.eup %2429  ;;  %vm1312_vm14 = vweird.f32 %v3382_v25  ;;  %v1363_v53 = vor.u32 1.1754944e-38, %v1362_v57 }
 0x1f9   : > { %v1299_v31 = vsel %vm1298_vm9, %v2424_v6, %v1295_v29  ;;  %2431 = vrcp.f32 %v3387_v35  ;;  %v3390_v52 = vpop.xlane.xlu0 %1091  ;;  %v1352_v17 = vmul.f32 %v2430_v30, %v3378_v21  ;;  %vm1357_vm15 = vweird.f32 %v2430_v30  ;;  %vm3418_vm4 = vmor %vm1311_vm2, %vm1312_vm14 }
 0x1fa   : > { %v1308_v14 = vsub.f32 1.0, %v1307_v33  ;;  %v1304_v42 = vsel %vm1301_vm10, %v1303_v5, %v1299_v31  ;;  %v1239_v32 = vsel %vm1238_vm12, %v2426_v43, %v1235_v45  ;;  %2433 = vrcp.f32 %v3390_v52  ;;  %vm1358_vm5 = vmor %vm1356_vm3, %vm1357_vm15  ;;  %v448_v31 = vld [vmem:[%s2897_s29 + $0xd8] sm:$0xff] }
 0x1fb   : > { %v1244_v46 = vsel %vm1241_vm13, %v1243_v37, %v1239_v32  ;;  %v1353_v6 = vsub.f32 1.0, %v1352_v17  ;;  %v1305_v60 = vmul.f32 %v3208_v48, %v1304_v42  ;;  %v452_v37 = vld [vmem:[%s2897_s29 + $0xf8] sm:$0xff]  ;;  %1921 = vmatpush.msrb.mxu2 %v448_v31  ;;  %v1197_v50 = vand.u32 2147483648, %v3387_v35 }
 0x1fc   : > { %v1309_v10 = vmul.f32 %v3382_v25, %v1308_v14  ;;  %v1245_v12 = vmul.f32 %v3210_v51, %v1244_v46  ;;  %1962 = vmatpush.msrb.mxu3 %v452_v37  ;;  %v1195_v11 = vand.u32 2147483647, %v3387_v35  ;;  %vm1191_vm9 = vweird.f32 %v3387_v35  ;;  %v440_v37 = vld [vmem:[%s2897_s29 + $0x98] sm:$0xff] }
 0x1fd   : > { %v1354_v16 = vmul.f32 %v2430_v30, %v1353_v6  ;;  %2248 = vmatmul.msk.f32.vlgmr.msra.gmra.mxu2 %vm882_vm1, %v1305_v60  ;;  %vm1251_vm11 = vweird.f32 %v3390_v52  ;;  %1839 = vmatpush.msrb.mxu0 %v440_v37 }
 0x1fe   : > { %v1310_v43 = vadd.f32 %v3382_v25, %v1309_v10  ;;  %2244 = vmatmul.msk.f32.vlgmr.msra.gmra.mxu1 %vm882_vm1, %v1245_v12  ;;  %vm1196_vm13 = vcmp.eq.f32.partialorder %v1195_v11, 8.507059e+37 }
 0x1ff   : > { %v3403_v44 = vpop.eup %2431  ;;  %v1355_v48 = vadd.f32 %v2430_v30, %v1354_v16 }
 0x200   : > { %v3407_v51 = vpop.xlane.xlu1 %1094  ;;  %v1187_v22 = vmul.f32 %v3403_v44, %v3387_v35  ;;  %v3413_v23 = vpop.xlane.xlu2 %1115  ;;  %v1314_v29 = vsel %vm3418_vm4, %v3382_v25, %v1310_v43  ;;  %vm1192_vm8 = vweird.f32 %v3403_v44  ;;  %v1257_v43 = vand.u32 2147483648, %v3390_v52 }
 0x201   : > { %2435 = vrcp.f32 %v3407_v51  ;;  %v3422_v3 = vpop.eup %2433  ;;  %v3426_v21 = vpop.xlane.xlu0 %1082  ;;  %v1359_v33 = vsel %vm1358_vm5, %v2430_v30, %v1355_v48  ;;  %v1319_v17 = vsel %vm1316_vm7, %v1318_v61, %v1314_v29  ;;  %v1198_v35 = vor.u32 1.1754944e-38, %v1197_v50  ;;  %vm1193_vm12 = vmor %vm1191_vm9, %vm1192_vm8 }
 0x202   : > { %2437 = vrcp.f32 %v3413_v23  ;;  %v1188_v5 = vsub.f32 1.0, %v1187_v22  ;;  %v1247_v45 = vmul.f32 %v3422_v3, %v3390_v52  ;;  %v1364_v14 = vsel %vm1361_vm6, %v1363_v53, %v1359_v33 }
 0x203   : > { %2439 = vrcp.f32 %v3426_v21  ;;  %v1320_v46 = vmul.f32 %v3218_v1, %v1319_v17  ;;  %v1365_v25 = vmul.f32 %v3221_v9, %v1364_v14  ;;  %vm1252_vm10 = vweird.f32 %v3422_v3  ;;  %v444_v14 = vld [vmem:[%s2897_s29 + $0xb8] sm:$0xff] }
 0x204   : > { %v1189_v42 = vmul.f32 %v3403_v44, %v1188_v5  ;;  %v1248_v32 = vsub.f32 1.0, %v1247_v45  ;;  %v1255_v22 = vand.u32 2147483647, %v3390_v52  ;;  %vm3473_vm14 = vmor %vm1251_vm11, %vm1252_vm10  ;;  %v1258_v5 = vor.u32 1.1754944e-38, %v1257_v43  ;;  %1880 = vmatpush.msrb.mxu1 %v444_v14 }
 0x205   : > { %2249 = vmatmul.msk.f32.gmra.mxu2 %vm882_vm1, %v1320_v46  ;;  %2252 = vmatmul.msk.f32.vlgmr.msra.gmra.mxu3 %vm882_vm1, %v1365_v25  ;;  %vm1266_vm15 = vweird.f32 %v3407_v51  ;;  %v451_v46 = vld [vmem:[%s2897_s29 + $0xf0] sm:$0xff]  ;;  %v1377_v25 = vand.u32 2147483648, %v3413_v23  ;;  %v1272_v50 = vand.u32 2147483648, %v3407_v51  ;;  %vm1371_vm5 = vweird.f32 %v3413_v23 }
 0x206   : > { %v1249_v1 = vmul.f32 %v3422_v3, %v1248_v32  ;;  %v1190_v60 = vadd.f32 %v3403_v44, %v1189_v42  ;;  %v447_v42 = vld [vmem:[%s2897_s29 + $0xd0] sm:$0xff]  ;;  %vm1256_vm2 = vcmp.eq.f32.partialorder %v1255_v22, 8.507059e+37  ;;  %1963 = vmatpush.msrb.mxu3 %v451_v46  ;;  %vm1206_vm6 = vweird.f32 %v3426_v21  ;;  %v446_v46 = vld [vmem:[%s2897_s29 + $0xc8] sm:$0xff] }
 0x207   : > { %v3439_v30 = vpop.eup %2435  ;;  %1922 = vmatpush.msrb.mxu2 %v447_v42 }
 0x208   : > { %v3441_v10 = vpop.eup %2437  ;;  %v3446_v6 = vpop.xlane.xlu1 %1106  ;;  %v1262_v48 = vmul.f32 %v3439_v30, %v3407_v51  ;;  %v1194_v53 = vsel %vm1193_vm12, %v3403_v44, %v1190_v60  ;;  %v1250_v29 = vadd.f32 %v3422_v3, %v1249_v1  ;;  %vm1267_vm9 = vweird.f32 %v3439_v30 }
 0x209   : > { %v3449_v12 = vpop.eup %2439  ;;  %v1367_v9 = vmul.f32 %v3441_v10, %v3413_v23  ;;  %v3454_v57 = vpop.xlane.xlu2 %1118  ;;  %2441 = vrcp.f32 %v3446_v6  ;;  %v1199_v52 = vsel %vm1196_vm13, %v1198_v35, %v1194_v53  ;;  %vm1372_vm3 = vweird.f32 %v3441_v10  ;;  %vm3549_vm12 = vmor %vm1266_vm15, %vm1267_vm9  ;;  %1923 = vmatpush.msrb.mxu2 %v446_v46 }
 0x20a   : > { %v1202_v16 = vmul.f32 %v3449_v12, %v3426_v21  ;;  %v3462_v61 = vpop.xlane.xlu0 %1121  ;;  %2443 = vrcp.f32 %v3454_v57  ;;  %v1263_v32 = vsub.f32 1.0, %v1262_v48  ;;  %v1200_v44 = vmul.f32 %v3232_v26, %v1199_v52  ;;  %vm1373_vm7 = vmor %vm1371_vm5, %vm1372_vm3 }
 0x20b   : > { %v1368_v18 = vsub.f32 1.0, %v1367_v9  ;;  %v1254_v17 = vsel %vm3473_vm14, %v3422_v3, %v1250_v29  ;;  %2445 = vrcp.f32 %v3462_v61  ;;  %v1212_v9 = vand.u32 2147483648, %v3426_v21 }
 0x20c   : > { %v1203_v27 = vsub.f32 1.0, %v1202_v16  ;;  %v1259_v11 = vsel %vm1256_vm2, %v1258_v5, %v1254_v17  ;;  %2241 = vmatmul.msk.f32.gmra.mxu0 %vm882_vm1, %v1200_v44  ;;  %vm1207_vm4 = vweird.f32 %v3449_v12  ;;  %v1210_v35 = vand.u32 2147483647, %v3426_v21  ;;  %v439_v44 = vld [vmem:[%s2897_s29 + $0x90] sm:$0xff] }
 0x20d   : > { %v1369_v45 = vmul.f32 %v3441_v10, %v1368_v18  ;;  %v1260_v3 = vmul.f32 %v3229_v24, %v1259_v11  ;;  %v1375_v18 = vand.u32 2147483647, %v3413_v23  ;;  %v1264_v24 = vmul.f32 %v3439_v30, %v1263_v32  ;;  %vm3524_vm8 = vmor %vm1206_vm6, %vm1207_vm4  ;;  %v443_v17 = vld [vmem:[%s2897_s29 + $0xb0] sm:$0xff]  ;;  %1840 = vmatpush.msrb.mxu0 %v439_v44 }
 0x20e   : > { %v1204_v31 = vmul.f32 %v3449_v12, %v1203_v27  ;;  %v1378_v27 = vor.u32 1.1754944e-38, %v1377_v25  ;;  %v1273_v53 = vor.u32 1.1754944e-38, %v1272_v50  ;;  %v1213_v23 = vor.u32 1.1754944e-38, %v1212_v9  ;;  %1881 = vmatpush.msrb.mxu1 %v443_v17 }
 0x20f   : > { %v3493_v26 = vpop.eup %2441  ;;  %v1370_v16 = vadd.f32 %v3441_v10, %v1369_v45  ;;  %2245 = vmatmul.msk.f32.gmra.mxu1 %vm882_vm1, %v1260_v3  ;;  %v1332_v33 = vand.u32 2147483648, %v3446_v6  ;;  %vm1376_vm10 = vcmp.eq.f32.partialorder %v1375_v18, 8.507059e+37  ;;  %v1392_v14 = vand.u32 2147483648, %v3454_v57  ;;  %v450_v3 = vld [vmem:[%s2897_s29 + $0xe8] sm:$0xff] }
 0x210   : > { %v3491_v1 = vpop.xlane.xlu1 %1085  ;;  %v1205_v48 = vadd.f32 %v3449_v12, %v1204_v31  ;;  %v3508_v22 = vpop.eup %2443  ;;  %v1322_v29 = vmul.f32 %v3493_v26, %v3446_v6  ;;  %vm1211_vm11 = vcmp.eq.f32.partialorder %v1210_v35, 8.507059e+37  ;;  %v1265_v32 = vadd.f32 %v3439_v30, %v1264_v24  ;;  %1964 = vmatpush.msrb.mxu3 %v450_v3 }
 0x211   : > { %v3498_v60 = vpop.xlane.xlu2 %1097  ;;  %2447 = vrcp.f32 %v3491_v1  ;;  %v3529_v21 = vpop.eup %2445  ;;  %v1382_v45 = vmul.f32 %v3508_v22, %v3454_v57  ;;  %v1374_v31 = vsel %vm1373_vm7, %v3441_v10, %v1370_v16  ;;  %v1270_v11 = vand.u32 2147483647, %v3407_v51 }
 0x212   : > { %v3502_v43 = vpop.xlane.xlu0 %1136  ;;  %v1209_v52 = vsel %vm3524_vm8, %v3449_v12, %v1205_v48  ;;  %v1379_v42 = vsel %vm1376_vm10, %v1378_v27, %v1374_v31  ;;  %v1323_v25 = vsub.f32 1.0, %v1322_v29  ;;  %v1269_v48 = vsel %vm3549_vm12, %v3439_v30, %v1265_v32 }
 0x213   : > { %2449 = vrcp.f32 %v3502_v43  ;;  %v1380_v10 = vmul.f32 %v3239_v40, %v1379_v42  ;;  %v1214_v50 = vsel %vm1211_vm11, %v1213_v23, %v1209_v52  ;;  %v1397_v40 = vmul.f32 %v3529_v21, %v3462_v61 }
 0x214   : > { %2451 = vrcp.f32 %v3498_v60  ;;  %v1215_v18 = vmul.f32 %v3242_v34, %v1214_v50  ;;  %v1383_v51 = vsub.f32 1.0, %v1382_v45  ;;  %v1407_v35 = vand.u32 2147483648, %v3462_v61  ;;  %v442_v50 = vld [vmem:[%s2897_s29 + $0xa8] sm:$0xff] }
 0x215   : > { %2253 = vmatmul.msk.f32.gmra.mxu3 %vm882_vm1, %v1380_v10  ;;  %vm1271_vm13 = vcmp.eq.f32.partialorder %v1270_v11, 8.507059e+37  ;;  %v1287_v29 = vand.u32 2147483648, %v3498_v60  ;;  %v1324_v45 = vmul.f32 %v3493_v26, %v1323_v25  ;;  %vm1326_vm14 = vweird.f32 %v3446_v6  ;;  %1882 = vmatpush.msrb.mxu1 %v442_v50  ;;  %v445_v50 = vld [vmem:[%s2897_s29 + $0xc0] sm:$0xff] }
 0x216   : > { %2242 = vmatmul.msk.f32.gmra.mxu0 %vm882_vm1, %v1215_v18  ;;  %v1274_v23 = vsel %vm1271_vm13, %v1273_v53, %v1269_v48  ;;  %v1227_v31 = vand.u32 2147483648, %v3491_v1  ;;  %vm1386_vm15 = vweird.f32 %v3454_v57  ;;  %v3586_v42 = vor.u32 1.1754944e-38, %v1392_v14  ;;  %1924 = vmatpush.msrb.mxu2 %v445_v50 }
 0x217   : > { %v3537_v37 = vpop.eup %2447  ;;  %v1275_v52 = vmul.f32 %v3244_v41, %v1274_v23  ;;  %v1333_v32 = vor.u32 1.1754944e-38, %v1332_v33  ;;  %v1398_v44 = vsub.f32 1.0, %v1397_v40  ;;  %v1384_v53 = vmul.f32 %v3508_v22, %v1383_v51 }
 0x218   : > { %v3554_v9 = vpop.xlane.xlu1 %1160  ;;  %v1217_v27 = vmul.f32 %v3537_v37, %v3491_v1  ;;  %v3595_v10 = vor.u32 1.1754944e-38, %v1407_v35  ;;  %v3597_v41 = vor.u32 1.1754944e-38, %v1287_v29  ;;  %v3601_v12 = vor.u32 1.1754944e-38, %v1227_v31  ;;  %v449_v29 = vld [vmem:[%s2897_s29 + $0xe0] sm:$0xff] }
 0x219   : > { %v3557_v16 = vpop.eup %2449  ;;  %v3565_v24 = vpop.xlane.xlu2 %1109  ;;  %2453 = vrcp.f32 %v3554_v9  ;;  %2246 = vmatmul.msk.f32.gmra.mxu1 %vm882_vm1, %v1275_v52  ;;  %v1482_v11 = vand.u32 2147483648, %v3502_v43  ;;  %v1325_v40 = vadd.f32 %v3493_v26, %v1324_v45  ;;  %v3610_v48 = vmul.f32 %v3529_v21, %v1398_v44  ;;  %1965 = vmatpush.msrb.mxu3 %v449_v29  ;;  %v438_v44 = vld [vmem:[%s2897_s29 + $0x88] sm:$0xff] }
 0x21a   : > { %v3572_v34 = vpop.eup %2451  ;;  %v1472_v30 = vmul.f32 %v3557_v16, %v3502_v43  ;;  %2455 = vrcp.f32 %v3565_v24  ;;  %v3579_v5 = vpop.xlane.xlu0 %1148  ;;  %v1218_v46 = vsub.f32 1.0, %v1217_v27  ;;  %vm1476_vm2 = vweird.f32 %v3502_v43  ;;  %v441_v27 = vld [vmem:[%s2897_s29 + $0xa0] sm:$0xff]  ;;  %1841 = vmatpush.msrb.mxu0 %v438_v44 }
 0x21b   : > { %v1277_v17 = vmul.f32 %v3572_v34, %v3498_v60  ;;  %2457 = vrcp.f32 %v3579_v5  ;;  %vm1477_vm3 = vweird.f32 %v3557_v16  ;;  %vm1327_vm4 = vweird.f32 %v3493_v26  ;;  %1883 = vmatpush.msrb.mxu1 %v441_v27  ;;  %v437_v44 = vld [vmem:[%s2897_s29 + $0x80] sm:$0xff] }
 0x21c   : > { %v1473_v14 = vsub.f32 1.0, %v1472_v30  ;;  %v1330_v51 = vand.u32 2147483647, %v3446_v6  ;;  %v1219_v23 = vmul.f32 %v3537_v37, %v1218_v46  ;;  %vm3623_vm5 = vmor %vm1326_vm14, %vm1327_vm4  ;;  %v1385_v52 = vadd.f32 %v3508_v22, %v1384_v53  ;;  %1842 = vmatpush.msrb.mxu0 %v437_v44 }
 0x21d   : > { %v1278_v30 = vsub.f32 1.0, %v1277_v17  ;;  %vm1221_vm6 = vweird.f32 %v3491_v1  ;;  %v1329_v17 = vsel %vm3623_vm5, %v3493_v26, %v1325_v40  ;;  %vm1387_vm8 = vweird.f32 %v3508_v22 }
 0x21e   : > { %v1474_v33 = vmul.f32 %v3557_v16, %v1473_v14  ;;  %vm1331_vm7 = vcmp.eq.f32.partialorder %v1330_v51, 8.507059e+37  ;;  %vm1281_vm9 = vweird.f32 %v3498_v60  ;;  %v1347_v14 = vand.u32 2147483648, %v3565_v24  ;;  %vm3646_vm10 = vmor %vm1386_vm15, %vm1387_vm8 }
 0x21f   : > { %v3593_v25 = vpop.eup %2453  ;;  %v1390_v40 = vand.u32 2147483647, %v3454_v57  ;;  %v1602_v27 = vand.u32 2147483648, %v3554_v9  ;;  %v1389_v31 = vsel %vm3646_vm10, %v3508_v22, %v1385_v52  ;;  %v1542_v50 = vand.u32 2147483648, %v3579_v5  ;;  %vm3689_vm15 = vmor %vm1476_vm2, %vm1477_vm3 }
 0x220   : > { %v1592_v3 = vmul.f32 %v3593_v25, %v3554_v9  ;;  %v3607_v18 = vpop.eup %2455  ;;  %v3636_v6 = vpop.xlane.xlu1 %1139  ;;  %v1279_v57 = vmul.f32 %v3572_v34, %v1278_v30  ;;  %vm1401_vm12 = vweird.f32 %v3462_v61  ;;  %vm1597_vm13 = vweird.f32 %v3593_v25 }
 0x221   : > { %v3616_v35 = vpop.xlane.xlu2 %1124  ;;  %v3638_v53 = vpop.eup %2457  ;;  %v1337_v46 = vmul.f32 %v3607_v18, %v3565_v24  ;;  %vm1391_vm11 = vcmp.eq.f32.partialorder %v1390_v40, 8.507059e+37  ;;  %v3675_v30 = vor.u32 1.1754944e-38, %v1482_v11  ;;  %vm1596_vm14 = vweird.f32 %v3554_v9 }
 0x222   : > { %v1593_v45 = vsub.f32 1.0, %v1592_v3  ;;  %v1334_v3 = vsel %vm1331_vm7, %v1333_v32, %v1329_v17  ;;  %v1532_v32 = vmul.f32 %v3638_v53, %v3579_v5  ;;  %2459 = vrcp.f32 %v3616_v35  ;;  %vm3705_vm2 = vmor %vm1596_vm14, %vm1597_vm13 }
 0x223   : > { %v1335_v29 = vmul.f32 %v3259_v0, %v1334_v3  ;;  %v1600_v0 = vand.u32 2147483647, %v3554_v9  ;;  %v1394_v22 = vsel %vm1391_vm11, %v3586_v42, %v1389_v31  ;;  %v1338_v52 = vsub.f32 1.0, %v1337_v46  ;;  %v3673_v3 = vpop.xlane.xlu0 %1127 }
 0x224   : > { %v1594_v51 = vmul.f32 %v3593_v25, %v1593_v45  ;;  %v3664_v45 = vadd.f32 %v3557_v16, %v1474_v33  ;;  %v1395_v17 = vmul.f32 %v3254_v49, %v1394_v22  ;;  %2461 = vrcp.f32 %v3636_v6 }
 0x225   : > { %2250 = vmatmul.msk.f32.gmra.mxu2 %vm882_vm1, %v1335_v29  ;;  %v3677_v33 = vor.u32 1.1754944e-38, %v1347_v14  ;;  %v3693_v46 = vor.u32 1.1754944e-38, %v1602_v27  ;;  %v1533_v11 = vsub.f32 1.0, %v1532_v32  ;;  %v1540_v14 = vand.u32 2147483647, %v3579_v5 }
 0x226   : > { %v3680_v26 = vadd.f32 %v3593_v25, %v1594_v51  ;;  %v3696_v40 = vor.u32 1.1754944e-38, %v1542_v50  ;;  %2254 = vmatmul.msk.f32.gmra.mxu3 %vm882_vm1, %v1395_v17  ;;  %v1479_v9 = vsel %vm3689_vm15, %v3557_v16, %v3664_v45  ;;  %2463 = vrcp.f32 %v3673_v3 }
 0x227   : > { %v1220_v27 = vadd.f32 %v3537_v37, %v1219_v23  ;;  %vm1222_vm3 = vweird.f32 %v3537_v37  ;;  %v4298_v31 = vand.u32 2147483647, %v3502_v43  ;;  %v3721_v16 = vmul.f32 %v3607_v18, %v1338_v52 }
 0x228   : > { %v3712_v29 = vpop.eup %2459  ;;  %vm3723_vm5 = vcmp.eq.f32.partialorder %v1600_v0, 8.507059e+37  ;;  %vm1537_vm7 = vweird.f32 %v3638_v53  ;;  %vm3730_vm8 = vmor %vm1221_vm6, %vm1222_vm3  ;;  %v1225_v43 = vand.u32 2147483647, %v3491_v1  ;;  %v1280_v50 = vadd.f32 %v3572_v34, %v1279_v57  ;;  %v3751_v57 = vpop.xlane.xlu1 %1151 }
 0x229   : > { %v3683_v42 = vpop.xlane.xlu2 %1163  ;;  %vm3716_vm4 = vcmp.eq.f32.partialorder %v4298_v31, 8.507059e+37  ;;  %vm1282_vm10 = vweird.f32 %v3572_v34  ;;  %v1599_v45 = vsel %vm3705_vm2, %v3593_v25, %v3680_v26  ;;  %v1412_v0 = vmul.f32 %v3712_v29, %v3616_v35 }
 0x22a   : > { %vm1416_vm11 = vweird.f32 %v3616_v35  ;;  %v1420_v22 = vand.u32 2147483647, %v3616_v35  ;;  %vm3747_vm6 = vmor %vm1281_vm9, %vm1282_vm10  ;;  %v3753_v52 = vpop.eup %2461  ;;  %v1534_v17 = vmul.f32 %v3638_v53, %v1533_v11  ;;  %vm1536_vm13 = vweird.f32 %v3579_v5 }
 0x22b   : > { %v1224_v25 = vsel %vm3730_vm8, %v3537_v37, %v1220_v27  ;;  %vm1226_vm14 = vcmp.eq.f32.partialorder %v1225_v43, 8.507059e+37  ;;  %v1284_v26 = vsel %vm3747_vm6, %v3572_v34, %v1280_v50  ;;  %vm1341_vm9 = vweird.f32 %v3565_v24 }
 0x22c   : > { %v1413_v49 = vsub.f32 1.0, %v1412_v0  ;;  %v1487_v51 = vmul.f32 %v3753_v52, %v3636_v6  ;;  %v1229_v31 = vsel %vm1226_vm14, %v3601_v12, %v1224_v25  ;;  %v1285_v11 = vand.u32 2147483647, %v3498_v60  ;;  %v3773_v34 = vpop.eup %2463 }
 0x22d   : > { %v1230_v63 = vmul.f32 %v3274_v59, %v1229_v31  ;;  %v1400_v37 = vadd.f32 %v3529_v21, %v3610_v48  ;;  %vm1402_vm15 = vweird.f32 %v3529_v21  ;;  %v1405_v27 = vand.u32 2147483647, %v3462_v61 }
 0x22e   : > { %v1414_v23 = vmul.f32 %v3712_v29, %v1413_v49  ;;  %v1422_v43 = vand.u32 2147483648, %v3616_v35  ;;  %v1497_v50 = vand.u32 2147483648, %v3636_v6  ;;  %vm1286_vm2 = vcmp.eq.f32.partialorder %v1285_v11, 8.507059e+37  ;;  %vm3780_vm3 = vmor %vm1401_vm12, %vm1402_vm15 }
 0x22f   : > { %vm1417_vm8 = vweird.f32 %v3712_v29  ;;  %2243 = vmatmul.msk.f32.gmra.mxu0 %vm882_vm1, %v1230_v63  ;;  %v1289_v60 = vsel %vm1286_vm2, %v3597_v41, %v1284_v26  ;;  %v1404_v12 = vsel %vm3780_vm3, %v3529_v21, %v1400_v37  ;;  %2465 = vrcp.f32 %v3683_v42  ;;  %v3800_v41 = vpop.xlane.xlu0 %1166 }
 0x230   : > { %v1535_v61 = vadd.f32 %v3638_v53, %v1534_v17  ;;  %vm3794_vm12 = vcmp.eq.f32.partialorder %v1540_v14, 8.507059e+37  ;;  %v1415_v1 = vadd.f32 %v3712_v29, %v1414_v23  ;;  %v1290_v63 = vmul.f32 %v3269_v19, %v1289_v60  ;;  %vm3816_vm6 = vmor %vm1416_vm11, %vm1417_vm8  ;;  %v3844_v32 = vpop.xlane.xlu1 %1130 }
 0x231   : > { %v3791_v48 = vpop.xlane.xlu2 %1154  ;;  %vm1406_vm10 = vcmp.eq.f32.partialorder %v1405_v27, 8.507059e+37  ;;  %v1488_v25 = vsub.f32 1.0, %v1487_v51  ;;  %v1427_v21 = vmul.f32 %v3773_v34, %v3673_v3  ;;  %2467 = vrcp.f32 %v3751_v57 }
 0x232   : > { %v1409_v26 = vsel %vm1406_vm10, %v3595_v10, %v1404_v12  ;;  %v1484_v14 = vsel %vm3716_vm4, %v3675_v30, %v1479_v9  ;;  %v1604_v17 = vsel %vm3723_vm5, %v3693_v46, %v1599_v45  ;;  %vm3820_vm14 = vcmp.eq.f32.partialorder %v1420_v22, 8.507059e+37  ;;  %2247 = vmatmul.msk.f32.gmra.mxu1 %vm882_vm1, %v1290_v63  ;;  %vm3836_vm5 = vmor %vm1536_vm13, %vm1537_vm7 }
 0x233   : > { %v1410_v30 = vmul.f32 %v3257_v62, %v1409_v26  ;;  %v1419_v46 = vsel %vm3816_vm6, %v3712_v29, %v1415_v1  ;;  %vm1491_vm4 = vweird.f32 %v3636_v6  ;;  %v1437_v35 = vand.u32 2147483648, %v3673_v3 }
 0x234   : > { %2469 = vrcp.f32 %v3800_v41  ;;  %v1423_v44 = vor.u32 1.1754944e-38, %v1422_v43  ;;  %v1498_v62 = vor.u32 1.1754944e-38, %v1497_v50  ;;  %v1340_v29 = vadd.f32 %v3607_v18, %v3721_v16 }
 0x235   : > { %2255 = vmatmul.msk.f32.gmra.mxu3 %vm882_vm1, %v1410_v30  ;;  %vm1342_vm11 = vweird.f32 %v3607_v18  ;;  %v3846_v45 = vpop.eup %2465  ;;  %v1539_v5 = vsel %vm3836_vm5, %v3638_v53, %v1535_v61  ;;  %v1489_v22 = vmul.f32 %v3753_v52, %v1488_v25  ;;  %v1428_v49 = vsub.f32 1.0, %v1427_v21 }
 0x236   : > { %vm1343_vm7 = vmor %vm1341_vm9, %vm1342_vm11  ;;  %v1345_v51 = vand.u32 2147483647, %v3565_v24  ;;  %v1424_v16 = vsel %vm3820_vm14, %v1423_v44, %v1419_v46  ;;  %v1617_v31 = vand.u32 2147483648, %v3683_v42  ;;  %2471 = vrcp.f32 %v3791_v48 }
 0x237   : > { %v1344_v11 = vsel %vm1343_vm7, %v3607_v18, %v1340_v29  ;;  %v3860_v37 = vpop.eup %2467  ;;  %v3862_v53 = vor.u32 1.1754944e-38, %v1437_v35  ;;  %v1485_v27 = vmul.f32 %v3272_v58, %v1484_v14  ;;  %2473 = vrcp.f32 %v3844_v32 }
 0x238   : > { %vm1346_vm13 = vcmp.eq.f32.partialorder %v1345_v51, 8.507059e+37  ;;  %v1607_v24 = vmul.f32 %v3846_v45, %v3683_v42  ;;  %v1547_v23 = vmul.f32 %v3860_v37, %v3751_v57  ;;  %v1605_v18 = vmul.f32 %v3289_v39, %v1604_v17  ;;  %v3895_v63 = vpop.xlane.xlu0 %1157 }
 0x239   : > { %v1349_v43 = vsel %vm1346_vm13, %v3677_v33, %v1344_v11  ;;  %v1544_v59 = vsel %vm3794_vm12, %v3696_v40, %v1539_v5  ;;  %v1429_v58 = vmul.f32 %v3773_v34, %v1428_v49  ;;  %v1425_v12 = vmul.f32 %v3298_v13, %v1424_v16  ;;  %v3880_v61 = vpop.xlane.xlu2 %1142  ;;  %v3911_v46 = vpop.xlane.xlu1 %1169 }
 0x23a   : > { %v3872_v50 = vpop.eup %2469  ;;  %v1350_v60 = vmul.f32 %v3284_v4, %v1349_v43  ;;  %vm1431_vm9 = vweird.f32 %v3673_v3  ;;  %v3883_v1 = vor.u32 1.1754944e-38, %v1617_v31  ;;  %v1557_v39 = vand.u32 2147483648, %v3751_v57  ;;  %2260 = vmatmul.msk.f32.vlgmr.msrb.gmra.mxu1 %vm882_vm1, %v1485_v27 }
 0x23b   : > { %v1622_v33 = vmul.f32 %v3872_v50, %v3800_v41  ;;  %v1490_v40 = vadd.f32 %v3753_v52, %v1489_v22  ;;  %v1548_v0 = vsub.f32 1.0, %v1547_v23  ;;  %v1632_v4 = vand.u32 2147483648, %v3800_v41  ;;  %2256 = vmatmul.msk.f32.vlgmr.msrb.gmra.mxu0 %vm882_vm1, %v1425_v12 }
 0x23c   : > { %2251 = vmatmul.msk.f32.gmra.mxu2 %vm882_vm1, %v1350_v60  ;;  %vm1492_vm15 = vweird.f32 %v3753_v52  ;;  %v1495_v13 = vand.u32 2147483647, %v3636_v6  ;;  %v3897_v25 = vpop.eup %2471  ;;  %v1608_v21 = vsub.f32 1.0, %v1607_v24  ;;  %vm1551_vm2 = vweird.f32 %v3751_v57 }
 0x23d   : > { %2268 = vmatmul.msk.f32.vlgmr.msrb.gmra.mxu3 %vm882_vm1, %v1605_v18  ;;  %v1572_v26 = vand.u32 2147483648, %v3791_v48  ;;  %v1452_v14 = vand.u32 2147483648, %v3844_v32  ;;  %vm1493_vm3 = vmor %vm1491_vm4, %vm1492_vm15  ;;  %2475 = vrcp.f32 %v3880_v61  ;;  %v3906_v17 = vpop.eup %2473  ;;  %v1623_v19 = vsub.f32 1.0, %v1622_v33 }
 0x23e   : > { %v1562_v10 = vmul.f32 %v3897_v25, %v3791_v48  ;;  %v1494_v30 = vsel %vm1493_vm3, %v3753_v52, %v1490_v40  ;;  %vm1496_vm8 = vcmp.eq.f32.partialorder %v1495_v13, 8.507059e+37  ;;  %vm1611_vm12 = vweird.f32 %v3683_v42 }
 0x23f   : > { %v1442_v35 = vmul.f32 %v3906_v17, %v3844_v32  ;;  %v1499_v6 = vsel %vm1496_vm8, %v1498_v62, %v1494_v30  ;;  %v1512_v9 = vand.u32 2147483648, %v3880_v61  ;;  %2477 = vrcp.f32 %v3895_v63 }
 0x240   : > { %v1549_v44 = vmul.f32 %v3860_v37, %v1548_v0  ;;  %v1558_v29 = vor.u32 1.1754944e-38, %v1557_v39  ;;  %v1563_v5 = vsub.f32 1.0, %v1562_v10  ;;  %v1500_v22 = vmul.f32 %v3303_v2, %v1499_v6  ;;  %v3986_v10 = vpop.xlane.xlu0 %1145 }
 0x241   : > { %v1609_v52 = vmul.f32 %v3846_v45, %v1608_v21  ;;  %v3921_v49 = vor.u32 1.1754944e-38, %v1632_v4  ;;  %v3923_v51 = vor.u32 1.1754944e-38, %v1572_v26  ;;  %2479 = vrcp.f32 %v3911_v46  ;;  %v3967_v0 = vpop.xlane.xlu2 %1133 }
 0x242   : > { %v3927_v62 = vmul.f32 %v3872_v50, %v1623_v19  ;;  %v3929_v16 = vor.u32 1.1754944e-38, %v1452_v14  ;;  %v1545_v31 = vmul.f32 %v3287_v7, %v1544_v59  ;;  %v1430_v11 = vadd.f32 %v3773_v34, %v1429_v58  ;;  %2261 = vmatmul.msk.f32.gmra.mxu1 %vm882_vm1, %v1500_v22 }
 0x243   : > { %v3933_v27 = vpop.eup %2475  ;;  %v1443_v2 = vsub.f32 1.0, %v1442_v35  ;;  %v3936_v24 = vor.u32 1.1754944e-38, %v1512_v9  ;;  %vm1432_vm10 = vweird.f32 %v3773_v34  ;;  %v1435_v23 = vand.u32 2147483647, %v3673_v3 }
 0x244   : > { %v3941_v43 = vmul.f32 %v3897_v25, %v1563_v5  ;;  %2264 = vmatmul.msk.f32.vlgmr.msrb.gmra.mxu2 %vm882_vm1, %v1545_v31  ;;  %v1502_v7 = vmul.f32 %v3933_v27, %v3880_v61  ;;  %v1587_v18 = vand.u32 2147483648, %v3895_v63  ;;  %vm1433_vm6 = vmor %vm1431_vm9, %vm1432_vm10  ;;  %v1550_v59 = vadd.f32 %v3860_v37, %v1549_v44 }
 0x245   : > { %v3950_v58 = vpop.eup %2477  ;;  %v1434_v60 = vsel %vm1433_vm6, %v3773_v34, %v1430_v11  ;;  %vm1436_vm14 = vcmp.eq.f32.partialorder %v1435_v23, 8.507059e+37  ;;  %vm1552_vm4 = vweird.f32 %v3860_v37  ;;  %v1555_v12 = vand.u32 2147483647, %v3751_v57 }
 0x246   : > { %vm1446_vm5 = vweird.f32 %v3844_v32  ;;  %v1577_v39 = vmul.f32 %v3950_v58, %v3895_v63  ;;  %v1645_v33 = vand.u32 2147483647, %v3911_v46  ;;  %v1439_v3 = vsel %vm1436_vm14, %v3862_v53, %v1434_v60  ;;  %vm3962_vm11 = vmor %vm1551_vm2, %vm1552_vm4 }
 0x247   : > { %v1610_v34 = vadd.f32 %v3846_v45, %v1609_v52  ;;  %v3969_v4 = vpop.eup %2479  ;;  %vm1566_vm7 = vweird.f32 %v3791_v48  ;;  %v1647_v13 = vand.u32 2147483648, %v3911_v46  ;;  %v1440_v21 = vmul.f32 %v3301_v15, %v1439_v3 }
 0x248   : > { %v1554_v57 = vsel %vm3962_vm11, %v3860_v37, %v1550_v59  ;;  %vm1612_vm13 = vweird.f32 %v3846_v45  ;;  %v1503_v53 = vsub.f32 1.0, %v1502_v7  ;;  %v1578_v26 = vsub.f32 1.0, %v1577_v39 }
 0x249   : > { %v1637_v14 = vmul.f32 %v3969_v4, %v3911_v46  ;;  %vm1556_vm9 = vcmp.eq.f32.partialorder %v1555_v12, 8.507059e+37  ;;  %vm3982_vm15 = vmor %vm1611_vm12, %vm1612_vm13  ;;  %vm1626_vm2 = vweird.f32 %v3800_v41  ;;  %2257 = vmatmul.msk.f32.gmra.mxu0 %vm882_vm1, %v1440_v21  ;;  %v1615_v30 = vand.u32 2147483647, %v3683_v42 }
 0x24a   : > { %v1559_v15 = vsel %vm1556_vm9, %v1558_v29, %v1554_v57  ;;  %v1614_v37 = vsel %vm3982_vm15, %v3846_v45, %v1610_v34  ;;  %2481 = vrcp.f32 %v3967_v0  ;;  %v1444_v35 = vmul.f32 %v3906_v17, %v1443_v2 }
 0x24b   : > { %v3996_v6 = vor.u32 1.1754944e-38, %v1587_v18  ;;  %v1638_v9 = vsub.f32 1.0, %v1637_v14  ;;  %v1560_v44 = vmul.f32 %v3316_v20, %v1559_v15  ;;  %v3999_v5 = vor.u32 1.1754944e-38, %v1647_v13 }
 0x24c   : > { %vm1616_vm3 = vcmp.eq.f32.partialorder %v1615_v30, 8.507059e+37  ;;  %v1467_v29 = vand.u32 2147483648, %v3967_v0  ;;  %2483 = vrcp.f32 %v3986_v10  ;;  %v1504_v45 = vmul.f32 %v3933_v27, %v1503_v53 }
 0x24d   : > { %v1639_v42 = vmul.f32 %v3969_v4, %v1638_v9  ;;  %vm1641_vm8 = vweird.f32 %v3911_v46  ;;  %vm1642_vm12 = vweird.f32 %v3969_v4  ;;  %2265 = vmatmul.msk.f32.gmra.mxu2 %vm882_vm1, %v1560_v44  ;;  %v1619_v22 = vsel %vm1616_vm3, %v3883_v1, %v1614_v37 }
 0x24e   : > { %vm1506_vm10 = vweird.f32 %v3880_v61  ;;  %v1579_v20 = vmul.f32 %v3950_v58, %v1578_v26  ;;  %v1620_v52 = vmul.f32 %v3314_v56, %v1619_v22  ;;  %v1465_v31 = vand.u32 2147483647, %v3967_v0 }
 0x24f   : > { %v1525_v11 = vand.u32 2147483647, %v3986_v10  ;;  %vm1461_vm6 = vweird.f32 %v3967_v0  ;;  %v4015_v2 = vor.u32 1.1754944e-38, %v1467_v29  ;;  %v1527_v23 = vand.u32 2147483648, %v3986_v10 }
 0x250   : > { %v1445_v7 = vadd.f32 %v3906_v17, %v1444_v35  ;;  %vm1447_vm14 = vweird.f32 %v3906_v17  ;;  %v4020_v1 = vpop.eup %2481  ;;  %vm1581_vm4 = vweird.f32 %v3895_v63  ;;  %v4024_v56 = vadd.f32 %v3969_v4, %v1639_v42  ;;  %2269 = vmatmul.msk.f32.gmra.mxu3 %vm882_vm1, %v1620_v52  ;;  %v4339_v52 = vld [vmem:[#allocation19_spill] sm:$0xff] }
 0x251   : > { %vm4029_vm11 = vmor %vm1446_vm5, %vm1447_vm14  ;;  %v1450_v59 = vand.u32 2147483647, %v3844_v32  ;;  %v1565_v60 = vadd.f32 %v3897_v25, %v3941_v43  ;;  %vm1567_vm13 = vweird.f32 %v3897_v25  ;;  %v1457_v12 = vmul.f32 %v4020_v1, %v3967_v0 }
 0x252   : > { %vm1462_vm9 = vweird.f32 %v4020_v1  ;;  %vm1521_vm15 = vweird.f32 %v3986_v10  ;;  %v1449_v39 = vsel %vm4029_vm11, %v3906_v17, %v1445_v7  ;;  %vm4046_vm5 = vmor %vm1566_vm7, %vm1567_vm13  ;;  %v1570_v43 = vand.u32 2147483647, %v3791_v48  ;;  %v2484_v3 = vpop.eup %2483 }
 0x253   : > { %vm4051_vm3 = vcmp.eq.f32.partialorder %v1645_v33, 8.507059e+37  ;;  %vm4055_vm14 = vcmp.eq.f32.partialorder %v1465_v31, 8.507059e+37  ;;  %vm1451_vm0 = vcmp.eq.f32.partialorder %v1450_v59, 8.507059e+37  ;;  %v1569_v17 = vsel %vm4046_vm5, %v3897_v25, %v1565_v60 }
 0x254   : > { %v1625_v13 = vadd.f32 %v3872_v50, %v3927_v62  ;;  %vm1627_vm7 = vweird.f32 %v3872_v50  ;;  %v1458_v48 = vsub.f32 1.0, %v1457_v12  ;;  %v1517_v33 = vmul.f32 %v2484_v3, %v3986_v10 }
 0x255   : > { %vm1522_vm11 = vweird.f32 %v2484_v3  ;;  %v1454_v21 = vsel %vm1451_vm0, %v3929_v16, %v1449_v39  ;;  %vm4069_vm13 = vmor %vm1626_vm2, %vm1627_vm7  ;;  %vm1571_vm5 = vcmp.eq.f32.partialorder %v1570_v43, 8.507059e+37  ;;  %v1630_v62 = vand.u32 2147483647, %v3800_v41 }
 0x256   : > { %v1455_v53 = vmul.f32 %v3327_v36, %v1454_v21  ;;  %v1629_v25 = vsel %vm4069_vm13, %v3872_v50, %v1625_v13  ;;  %v1459_v26 = vmul.f32 %v4020_v1, %v1458_v48  ;;  %v1518_v14 = vsub.f32 1.0, %v1517_v33  ;;  %vm4085_vm0 = vmor %vm1641_vm8, %vm1642_vm12 }
 0x257   : > { %v1574_v16 = vsel %vm1571_vm5, %v3923_v51, %v1569_v17  ;;  %v1505_v19 = vadd.f32 %v3933_v27, %v1504_v45  ;;  %vm1631_vm2 = vcmp.eq.f32.partialorder %v1630_v62, 8.507059e+37  ;;  %vm1507_vm7 = vweird.f32 %v3933_v27  ;;  %vm4102_vm12 = vmor %vm1461_vm6, %vm1462_vm9 }
 0x258   : > { %2258 = vmatmul.msk.f32.gmra.mxu0 %vm882_vm1, %v1455_v53  ;;  %v1575_v50 = vmul.f32 %v3330_v38, %v1574_v16  ;;  %v1510_v41 = vand.u32 2147483647, %v3880_v61  ;;  %v1460_v51 = vadd.f32 %v4020_v1, %v1459_v26  ;;  %v1519_v15 = vmul.f32 %v2484_v3, %v1518_v14  ;;  %vm1508_vm8 = vmor %vm1506_vm10, %vm1507_vm7 }
 0x259   : > { %v1634_v37 = vsel %vm1631_vm2, %v3921_v49, %v1629_v25  ;;  %v1580_v46 = vadd.f32 %v3950_v58, %v1579_v20  ;;  %v1509_v35 = vsel %vm1508_vm8, %v3933_v27, %v1505_v19  ;;  %vm1582_vm5 = vweird.f32 %v3950_v58  ;;  %vm4125_vm6 = vmor %vm1521_vm15, %vm1522_vm11 }
 0x25a   : > { %2266 = vmatmul.msk.f32.gmra.mxu2 %vm882_vm1, %v1575_v50  ;;  %v1635_v30 = vmul.f32 %v3321_v28, %v1634_v37  ;;  %vm1511_vm13 = vcmp.eq.f32.partialorder %v1510_v41, 8.507059e+37  ;;  %v1520_v61 = vadd.f32 %v2484_v3, %v1519_v15  ;;  %vm4113_vm10 = vmor %vm1581_vm4, %vm1582_vm5  ;;  %v1585_v9 = vand.u32 2147483647, %v3895_v63 }
 0x25b   : > { %v1514_v49 = vsel %vm1511_vm13, %v3936_v24, %v1509_v35  ;;  %v1644_v28 = vsel %vm4085_vm0, %v3969_v4, %v4024_v56  ;;  %v1528_v24 = vor.u32 1.1754944e-38, %v1527_v23  ;;  %v1584_v63 = vsel %vm4113_vm10, %v3950_v58, %v1580_v46 }
 0x25c   : > { %2270 = vmatmul.msk.f32.gmra.mxu3 %vm882_vm1, %v1635_v30  ;;  %v1515_v44 = vmul.f32 %v3339_v8, %v1514_v49  ;;  %v1464_v4 = vsel %vm4102_vm12, %v4020_v1, %v1460_v51  ;;  %vm1586_vm4 = vcmp.eq.f32.partialorder %v1585_v9, 8.507059e+37  ;;  %v1649_v29 = vsel %vm4051_vm3, %v3999_v5, %v1644_v28 }
 0x25d   : > { %v1469_v45 = vsel %vm4055_vm14, %v4015_v2, %v1464_v4  ;;  %v1524_v8 = vsel %vm4125_vm6, %v2484_v3, %v1520_v61  ;;  %vm1526_vm9 = vcmp.eq.f32.partialorder %v1525_v11, 8.507059e+37  ;;  %v1589_v58 = vsel %vm1586_vm4, %v3996_v6, %v1584_v63 }
 0x25e   : > { %2262 = vmatmul.msk.f32.gmra.mxu1 %vm882_vm1, %v1515_v44  ;;  %v1470_v42 = vmul.f32 %v3353_v47, %v1469_v45  ;;  %v1590_v22 = vmul.f32 %v3341_v55, %v1589_v58  ;;  %v1529_v5 = vsel %vm1526_vm9, %v1528_v24, %v1524_v8  ;;  %v1650_v20 = vmul.f32 %v3345_v54, %v1649_v29 }
 0x25f   : > { %v1530_v31 = vmul.f32 %v4339_v52, %v1529_v5  ;;  %vm4340_vm15 = vcmask 523264  }
 0x260   : > { %2259 = vmatmul.msk.f32.gmra.mxu0 %vm882_vm1, %v1470_v42  ;;  %vm4341_vm3 = vmmov %vm4340_vm15 }
 0x262   : > { %2267 = vmatmul.msk.f32.gmra.mxu2 %vm882_vm1, %v1590_v22 }
 0x264   : > { %2271 = vmatmul.msk.f32.gmra.mxu3 %vm882_vm1, %v1650_v20 }
 0x266   : > { %2263 = vmatmul.msk.f32.gmra.mxu1 %vm882_vm1, %v1530_v31  ;;  %vm4342_vm1 = vmmov %vm4341_vm3 }
 0x267   : > { %vm4343_vm14 = vmmov %vm4342_vm1 }
 0x268   : > { %vm4344_vm11 = vmmov %vm4342_vm1 }
 0x269   : > { %vm4345_vm0 = vmmov %vm4342_vm1 }
 0x26a   : > { %vm4346_vm2 = vmmov %vm4345_vm0 }
 0x26b   : > { %vm4347_vm7 = vmmov %vm4345_vm0 }
 0x26c   : > { %vm4348_vm8 = vmmov %vm4345_vm0 }
 0x26d   : > { %vm4349_vm12 = vmmov %vm4345_vm0 }
 0x26e   : > { %vm4350_vm13 = vmmov %vm4345_vm0 }
 0x26f   : > { %vm4351_vm5 = vmmov %vm4345_vm0 }
 0x270   : > { %vm4352_vm10 = vmmov %vm4345_vm0 }
 0x271   : > { %vm4353_vm6 = vmmov %vm4345_vm0 }
 0x272   : > { %v1680_v10 = vpop.f32.mrf.mxu0  ;;  %vm4354_vm4 = vmmov %vm4345_vm0 }
 0x273   : > { %1979 = vst.msk [vmem:[%s4158_s7] sm:$0xff] %vm4340_vm15, %v1680_v10  ;;  %vm4355_vm9 = vmmov %vm4345_vm0 }
 0x274   : > { %vm4356_vm15 = vmmov %vm4345_vm0 }
 0x27b   : > { %v1721_v55 = vpop.f32.mrf.mxu1 }
 0x27c   : > { %1983 = vst.msk [vmem:[%s4158_s7 + $0x20] sm:$0xff] %vm4341_vm3, %v1721_v55  ;;  %vm4357_vm3 = vmmov %vm4345_vm0 }
 0x280   : > { %v1762_v54 = vpop.f32.mrf.mxu2 }
 0x281   : > { %1987 = vst.msk [vmem:[%s4158_s7 + $0x40] sm:$0xff] %vm4342_vm1, %v1762_v54  ;;  %vm4358_vm1 = vmmov %vm4345_vm0 }
 0x288   : > { %v1765_v47 = vpop.f32.mrf.mxu2  ;;  %v1803_v6 = vpop.f32.mrf.mxu3 }
 0x289   : > { %1988 = vst.msk [vmem:[%s4158_s7 + $0x48] sm:$0xff] %vm4343_vm14, %v1765_v47  ;;  %v1683_v11 = vpop.f32.mrf.mxu0  ;;  %vm4359_vm14 = vmmov %vm4345_vm0 }
 0x28a   : > { %1991 = vst.msk [vmem:[%s4158_s7 + $0x60] sm:$0xff] %vm4344_vm11, %v1803_v6  ;;  %vm4360_vm11 = vmmov %vm4345_vm0 }
 0x28b   : > { %1980 = vst.msk [vmem:[%s4158_s7 + $0x8] sm:$0xff] %vm4345_vm0, %v1683_v11 }
 0x28c   : > { %v1724_v2 = vpop.f32.mrf.mxu1 }
 0x28d   : > { %1984 = vst.msk [vmem:[%s4158_s7 + $0x28] sm:$0xff] %vm4346_vm2, %v1724_v2  ;;  %vm4361_vm2 = vmmov %vm4345_vm0 }
 0x293   : > { %v1686_v23 = vpop.f32.mrf.mxu0 }
 0x294   : > { %1981 = vst.msk [vmem:[%s4158_s7 + $0x10] sm:$0xff] %vm4347_vm7, %v1686_v23  ;;  %vm4362_vm7 = vmmov %vm4345_vm0 }
 0x296   : > { %v1727_v7 = vpop.f32.mrf.mxu1 }
 0x297   : > { %1985 = vst.msk [vmem:[%s4158_s7 + $0x30] sm:$0xff] %vm4348_vm8, %v1727_v7  ;;  %vm4363_vm8 = vmmov %vm4345_vm0 }
 0x298   : > { %v1806_v1 = vpop.f32.mrf.mxu3 }
 0x299   : > { %1992 = vst.msk [vmem:[%s4158_s7 + $0x68] sm:$0xff] %vm4349_vm12, %v1806_v1  ;;  %vm4364_vm12 = vmmov %vm4345_vm0 }
 0x2a8   : > { %v1768_v56 = vpop.f32.mrf.mxu2 }
 0x2a9   : > { %1989 = vst.msk [vmem:[%s4158_s7 + $0x50] sm:$0xff] %vm4350_vm13, %v1768_v56  ;;  %v1809_v18 = vpop.f32.mrf.mxu3  ;;  %vm4365_vm13 = vmmov %vm4345_vm0 }
 0x2aa   : > { %1993 = vst.msk [vmem:[%s4158_s7 + $0x70] sm:$0xff] %vm4351_vm5, %v1809_v18  ;;  %vm4366_vm5 = vmmov %vm4345_vm0 }
 0x2ac   : > { %v1689_v59 = vpop.f32.mrf.mxu0 }
 0x2ad   : > { %1982 = vst.msk [vmem:[%s4158_s7 + $0x18] sm:$0xff] %vm4352_vm10, %v1689_v59  ;;  %vm4367_vm10 = vmmov %vm4345_vm0 }
 0x2af   : > { %v1730_v60 = vpop.f32.mrf.mxu1 }
 0x2b0   : > { %1986 = vst.msk [vmem:[%s4158_s7 + $0x38] sm:$0xff] %vm4353_vm6, %v1730_v60  ;;  %vm4368_vm6 = vmmov %vm4345_vm0 }
 0x2b7   : > { %v1885_v39 = vpop.f32.mrf.mxu1 }
 0x2b8   : > { %v1812_v12 = vpop.f32.mrf.mxu3  ;;  %v1844_v32 = vpop.f32.mrf.mxu0  ;;  %1999 = vst.msk [vmem:[%s4158_s7 + $0xa0] sm:$0xff] %vm4355_vm9, %v1885_v39  ;;  %vm4370_vm9 = vmmov %vm4345_vm0 }
 0x2b9   : > { %1994 = vst.msk [vmem:[%s4158_s7 + $0x78] sm:$0xff] %vm4354_vm4, %v1812_v12  ;;  %vm4369_vm4 = vmmov %vm4345_vm0 }
 0x2ba   : > { %1995 = vst.msk [vmem:[%s4158_s7 + $0x80] sm:$0xff] %vm4356_vm15, %v1844_v32 }
 0x2bf   : > { %v1771_v43 = vpop.f32.mrf.mxu2  ;;  %v1888_v40 = vpop.f32.mrf.mxu1 }
 0x2c0   : > { %1990 = vst.msk [vmem:[%s4158_s7 + $0x58] sm:$0xff] %vm4357_vm3, %v1771_v43  ;;  %v1967_v3 = vpop.f32.mrf.mxu3 }
 0x2c1   : > { %2007 = vst.msk [vmem:[%s4158_s7 + $0xe0] sm:$0xff] %vm4358_vm1, %v1967_v3 }
 0x2c2   : > { %2000 = vst.msk [vmem:[%s4158_s7 + $0xa8] sm:$0xff] %vm4359_vm14, %v1888_v40 }
 0x2c6   : > { %v1847_v34 = vpop.f32.mrf.mxu0 }
 0x2c7   : > { %v1926_v17 = vpop.f32.mrf.mxu2  ;;  %1996 = vst.msk [vmem:[%s4158_s7 + $0x88] sm:$0xff] %vm4360_vm11, %v1847_v34 }
 0x2c8   : > { %2003 = vst.msk [vmem:[%s4158_s7 + $0xc0] sm:$0xff] %vm4345_vm0, %v1926_v17 }
 0x2d0   : > { %v1929_v13 = vpop.f32.mrf.mxu2 }
 0x2d1   : > { %2004 = vst.msk [vmem:[%s4158_s7 + $0xc8] sm:$0xff] %vm4361_vm2, %v1929_v13 }
 0x2d3   : > { %v1970_v48 = vpop.f32.mrf.mxu3 }
 0x2d4   : > { %2008 = vst.msk [vmem:[%s4158_s7 + $0xe8] sm:$0xff] %vm4362_vm7, %v1970_v48 }
 0x2d5   : > { %v1850_v33 = vpop.f32.mrf.mxu0 }
 0x2d6   : > { %1997 = vst.msk [vmem:[%s4158_s7 + $0x90] sm:$0xff] %vm4363_vm8, %v1850_v33 }
 0x2db   : > { %v1891_v21 = vpop.f32.mrf.mxu1 }
 0x2dc   : > { %2001 = vst.msk [vmem:[%s4158_s7 + $0xb0] sm:$0xff] %vm4364_vm12, %v1891_v21 }
 0x2dd   : > { %v1932_v57 = vpop.f32.mrf.mxu2  ;;  %v1853_v53 = vpop.f32.mrf.mxu0 }
 0x2de   : > { %2005 = vst.msk [vmem:[%s4158_s7 + $0xd0] sm:$0xff] %vm4365_vm13, %v1932_v57 }
 0x2df   : > { %v1973_v25 = vpop.f32.mrf.mxu3  ;;  %1998 = vst.msk [vmem:[%s4158_s7 + $0x98] sm:$0xff] %vm4366_vm5, %v1853_v53 }
 0x2e0   : > { %2009 = vst.msk [vmem:[%s4158_s7 + $0xf0] sm:$0xff] %vm4367_vm10, %v1973_v25 }
 0x2e3   : > { %v1894_v62 = vpop.f32.mrf.mxu1 }
 0x2e4   : > { %2002 = vst.msk [vmem:[%s4158_s7 + $0xb8] sm:$0xff] %vm4368_vm6, %v1894_v62 }
 0x2e5   : > { %v1935_v26 = vpop.f32.mrf.mxu2 }
 0x2e6   : > { %2006 = vst.msk [vmem:[%s4158_s7 + $0xd8] sm:$0xff] %vm4369_vm4, %v1935_v26 }
 0x2e7   : > { %v1976_v14 = vpop.f32.mrf.mxu3 }
 0x2e8   : > { %2010 = vst.msk [vmem:[%s4158_s7 + $0xf8] sm:$0xff] %vm4370_vm9, %v1976_v14 }
 0x2e9   : > { %2632 = shalt.err (!%p2629_p5)
}
 0x2ea   : > { %s2684_s26 = smov 128   ;;  %s2685_s13 = smov 8  }
 0x2eb   : > { %2296 = dma.vmem_to_hbm [thread:$0]  (%p2808_p11), %s2026_s4, 4096, %s2028_s24, %s2012_s30, %s2684_s26, %s2684_s26, %s2685_s13  }
 0x2ec PF: > { %s2042_s16 = sand.u32 1, %s2667_s0   ;;  %p4371_p7 = scmp.ge.s32.totalorder %s2679_s20, 2 }
 0x2ed   : > { %s2043_s28 = scalar_lea.sflag [#allocation6], %s2042_s16 }
 0x2ee   : > { %p2313_p10 = pnand %p4371_p7, %p2812_p12 }
 0x2f0   : > { %p2314_p13 = pneg %p2313_p10 }
 0x2f2   : > { %2662 = dma.done.wait (%p2314_p13), %s2043_s28, 4096  }
 0x2f3   : > { %2664 = vsyncadd (%p2314_p13), %s2043_s28, 4294963200  ;;  %s4372_s20 = sld [smem:[#allocation17_spill]]  ;;  %s4374_s0 = smov %s2671_s18 }
 0x2f4   : > { %s4373_s11 = sld [smem:[#allocation18_spill]]  ;;  %s4375_s18 = smov %s2675_s19 }
 0x2f9   : > { %p23_p0 = scmp.ge.s32.totalorder %s4372_s20, 4  }
 0x2fa   : > { %s4376_s19 = smov %s4373_s11 }
 0x2fb   :  { %25 = sbr.rel (!%p23_p0) target bundleno = 11 (0xb), region = 109 }
 0x300   :  { %2049 = vsyncpa [#allocation5], 1 }
 0x301   :  { %2051 = vsyncpa [#allocation5 + $0x1], 1 }
 0x302   :  { %2052 = vsyncpa [#allocation8], 1 }
 0x303   :  { %2054 = vsyncpa [#allocation8 + $0x1], 1 }
 0x304   :  { %2055 = vsyncpa [#allocation11], 1 }
 0x305   :  { %2056 = vsyncpa [#allocation6], 1 }
 0x306   :  { %2058 = vsyncpa [#allocation6 + $0x1], 1 }

</bundles_post_ra>
